<compile_context>
chip_gen: v5e
topology: v5e:2x2
jax: 0.10.0
libtpu: 0.0.40
codegen_flags: <defaults>
</compile_context>

<pallas_src>
import jax
import jax.numpy as jnp
from jax import lax
from jax.experimental import pallas as pl
from jax.experimental.pallas import tpu as pltpu


def _render_kernel(mask_ref, depth_ref, density_ref, feat_ref, out_ref):
    depth = depth_ref[...]                       # (R, P) f32
    density = density_ref[...]                   # (R, P) f32
    R, P = depth.shape
    F = feat_ref.shape[0]
    C_pad = out_ref.shape[0]

    lane = lax.broadcasted_iota(jnp.int32, (R, P), 1)
    last = lane == (P - 1)

    # deltas_i = depth_{i+1} - depth_i ; last delta = 1e10 (PyTorch sentinel).
    # The wrapped/last concatenated element never survives: `last` overwrites it.
    nxt = jnp.concatenate([depth[:, 1:], depth[:, -1:]], axis=-1)
    deltas = jnp.where(last, jnp.float32(1e10), nxt - depth)

    sd = density * deltas                        # sigma_i * delta_i, (R, P)
    # The sentinel column never contributes to the exclusive sum; zero it so an
    # extreme density can never push inf into the scan matmul.
    sd_masked = jnp.where(last, jnp.float32(0.0), sd)

    # Exclusive prefix sum over points on the MXU against a strictly-lower-
    # triangular mask: excl[r, i] = sum_{j < i} sd[r, j].
    excl = jnp.dot(
        sd_masked,
        mask_ref[...],
        preferred_element_type=jnp.float32,
        precision=lax.Precision.HIGHEST,
    )                                            # (R, P)

    transmittance = jnp.exp(-excl)               # T_i
    alpha = 1.0 - jnp.exp(-sd)                   # 1 - exp(-sigma_i * delta_i)
    weights = transmittance * alpha              # (R, P) f32

    # Aggregate: out[c, r] = sum_p chan[c, r, p] * w[r, p].  Feature stays in
    # its storage dtype (e.g. bf16) until this multiply; the upcast fuses into
    # the VPU multiply/reduce loop.
    feat = feat_ref[...].astype(jnp.float32)                       # (F, R, P)
    feat_agg = jnp.sum(feat * weights[None, :, :], axis=-1)        # (F, R)
    depth_agg = jnp.sum((depth * weights)[None, :, :], axis=-1)    # (1, R)

    out_ref[0:F, :] = feat_agg
    out_ref[F:F + 1, :] = depth_agg
    pad = C_pad - (F + 1)
    if pad:
        out_ref[F + 1:, :] = jnp.zeros((pad, R), jnp.float32)


def _round_up(x, m):
    return ((x + m - 1) // m) * m


def _vmem_limit_bytes():
    phys = None
    try:
        phys = getattr(pltpu.get_tpu_info(), "vmem_capacity_bytes", None)
    except Exception:
        phys = None
    if not phys:
        phys = 64 * 1024 * 1024          # conservative fallback (v7x per-core)
    return int(min(phys // 2, 96 * 1024 * 1024))


def _pick_chunk(B, P, F, feat_bytes, requested, vmem_budget):
    """Largest multiple-of-8 divisor of B whose per-step footprint fits VMEM."""
    c_pad = _round_up(F + 1, 8)
    per_ray = P * (2 * F * feat_bytes      # feature tile (double-buffered)
                   + 2 * 4 + 2 * 4         # depth + density tiles (double-buffered)
                   + (F + 5) * 4)          # in-kernel f32 temporaries
    fixed = 2 * P * P * 4 + 2 * c_pad * 4  # scan mask + output tile
    cap = max(8, (vmem_budget - fixed) // per_ray)
    chunk = min(requested, cap, B)
    if chunk >= B and B >= 16:
        chunk = B // 2                     # >= 2 grid steps (v7x megacore)
    chunk = max(8, (chunk // 8) * 8)
    best = 8
    for d in range(8, chunk + 1, 8):
        if B % d == 0:
            best = d
    return best, c_pad


def volume_render(depth_values, density, feature_cf, *, chunk_size=4096):
    """Volume rendering weights + aggregation (VolumeRenderer.forward math).

    depth_values: (B, P) f32 sample depths along each ray.
    density:      (B, P) densities from implicit_fn.
    feature_cf:   (F, B, P) features, channels-first (any float dtype; bf16
                  recommended -- it is streamed as-is and upcast in-kernel).
    Returns {"feature": (B, F) f32, "depth": (B, 1) f32}.
    """
    depth_values = depth_values.astype(jnp.float32)
    density = density.astype(jnp.float32)

    F, B, P = feature_cf.shape
    assert depth_values.shape == (B, P) and density.shape == (B, P)
    assert B % 8 == 0, "number of rays must be a multiple of 8"

    vmem_limit = _vmem_limit_bytes()
    chunk, C_pad = _pick_chunk(B, P, F, feature_cf.dtype.itemsize, chunk_size,
                               int(vmem_limit * 0.9))

    # Strictly-lower-triangular mask for the MXU exclusive scan, built once;
    # constant index_map -> not re-DMA'd across grid steps.
    idx = jnp.arange(P)
    mask = (idx[:, None] < idx[None, :]).astype(jnp.float32)    # (P, P)

    out = pl.pallas_call(
        _render_kernel,
        out_shape=jax.ShapeDtypeStruct((C_pad, B), jnp.float32),
        grid=(B // chunk,),
        in_specs=[
            pl.BlockSpec((P, P), lambda c: (0, 0)),
            pl.BlockSpec((chunk, P), lambda c: (c, 0)),
            pl.BlockSpec((chunk, P), lambda c: (c, 0)),
            pl.BlockSpec((F, chunk, P), lambda c: (0, c, 0)),
        ],
        out_specs=pl.BlockSpec((C_pad, chunk), lambda c: (0, c)),
        compiler_params=pltpu.CompilerParams(
            dimension_semantics=("parallel",),
            vmem_limit_bytes=vmem_limit,
        ),
    )(mask, depth_values, density, feature_cf)                  # (C_pad, B)

    return {"feature": out[:F].T, "depth": out[F][:, None]}


def _reference(depth_values, density, feature_cf):
    # Pure-JAX reference matching the PyTorch sequential loop exactly
    # (true exclusive cumsum: never subtracts the 1e10 sentinel term).
    f = feature_cf.astype(jnp.float32)
    deltas = jnp.concatenate(
        [depth_values[:, 1:] - depth_values[:, :-1],
         jnp.full_like(depth_values[:, :1], 1e10)],
        axis=-1,
    )
    sd = density * deltas
    sd_shift = jnp.concatenate([jnp.zeros_like(sd[:, :1]), sd[:, :-1]], axis=-1)
    excl = jnp.cumsum(sd_shift, axis=-1)
    weights = jnp.exp(-excl) * (1.0 - jnp.exp(-sd))             # (B, P)
    feat = jnp.einsum("fbp,bp->bf", f, weights)                 # (B, F)
    depth = jnp.sum(weights * depth_values, axis=1, keepdims=True)
    return {"feature": feat, "depth": depth}


if __name__ == "__main__":
    key = jax.random.PRNGKey(0)
    k1, k2, k3 = jax.random.split(key, 3)

    B = 256      # total rays (ray_bundle batch)
    P = 128      # n_points per ray (lane-dense)
    F = 3        # feature (e.g. RGB) dim

    # Monotonically increasing sample depths per ray (what the sampler produces).
    step = 0.05 + 0.1 * jax.random.uniform(k1, (B, P), dtype=jnp.float32)
    depth_values = jnp.cumsum(step, axis=-1) + 1.0              # (B, P)

    # Non-negative densities (f32) and channels-first bf16 features, i.e. the
    # layouts/dtypes implicit_fn can emit directly -- no wrapper re-layout.
    density = jax.nn.softplus(jax.random.normal(k2, (B, P), dtype=jnp.float32))
    feature = jax.random.uniform(k3, (F, B, P), dtype=jnp.float32).astype(jnp.bfloat16)

    out = volume_render(depth_values, density, feature)
    jax.block_until_ready(out)

    ref = _reference(depth_values, density, feature)
    assert out["feature"].shape == (B, F)
    assert out["depth"].shape == (B, 1)
    assert jnp.allclose(out["feature"], ref["feature"], atol=1e-5, rtol=1e-4)
    assert jnp.allclose(out["depth"], ref["depth"], atol=1e-4, rtol=1e-4)

    # TODO(synk): sampler / implicit_fn are external modules; this kernel covers
    # the renderer math (weights + aggregation) on their outputs.
    print("KERNEL_OK")
</pallas_src>

<mosaic_0001>
module attributes {stable_mosaic.version = 11 : i64} {
  func.func @_render_kernel(%arg0: i32, %arg1: memref<128x128xf32, #tpu.memory_space<vmem>>, %arg2: memref<128x128xf32, #tpu.memory_space<vmem>>, %arg3: memref<128x128xf32, #tpu.memory_space<vmem>>, %arg4: memref<3x128x128xbf16, #tpu.memory_space<vmem>>, %arg5: memref<8x128xf32, #tpu.memory_space<vmem>>) attributes {dimension_semantics = [#tpu.dimension_semantics<parallel>], iteration_bounds = array<i64: 2>, scalar_prefetch = 0 : i64, scratch_operands = 0 : i64, tpu.core_type = #tpu.core_type<tc>, window_params = [{pipeline_mode = #tpu.pipeline_mode<synchronous>, transform_indices = @transform_0, window_bounds = array<i64: 128, 128>}, {transform_indices = @transform_1, window_bounds = array<i64: 128, 128>}, {transform_indices = @transform_2, window_bounds = array<i64: 128, 128>}, {transform_indices = @transform_3, window_bounds = array<i64: 3, 128, 128>}, {transform_indices = @transform_4, window_bounds = array<i64: 8, 128>}]} {
    %c0 = arith.constant 0 : index
    %c0_0 = arith.constant 0 : index
    %0 = vector.load %arg2[%c0, %c0_0] : memref<128x128xf32, #tpu.memory_space<vmem>>, vector<128x128xf32>
    %c0_1 = arith.constant 0 : index
    %c0_2 = arith.constant 0 : index
    %1 = vector.load %arg3[%c0_1, %c0_2] : memref<128x128xf32, #tpu.memory_space<vmem>>, vector<128x128xf32>
    %2 = tpu.iota {dimensions = array<i32: 1>} : vector<128x128xi32>
    %c127_i32 = arith.constant 127 : i32
    %3 = vector.broadcast %c127_i32 : i32 to vector<128x128xi32>
    %4 = arith.cmpi eq, %2, %3 : vector<128x128xi32>
    %5 = vector.extract_strided_slice %0 {offsets = [0, 1], sizes = [128, 127], strides = [1, 1]} : vector<128x128xf32> to vector<128x127xf32>
    %6 = vector.extract_strided_slice %0 {offsets = [0, 127], sizes = [128, 1], strides = [1, 1]} : vector<128x128xf32> to vector<128x1xf32>
    %7 = tpu.concatenate %5, %6 in 1 : vector<128x127xf32>, vector<128x1xf32> -> vector<128x128xf32>
    %8 = arith.subf %7, %0 : vector<128x128xf32>
    %cst = arith.constant 1.000000e+10 : f32
    %9 = vector.broadcast %cst : f32 to vector<128x128xf32>
    %10 = arith.select %4, %9, %8 : vector<128x128xi1>, vector<128x128xf32>
    %11 = arith.mulf %1, %10 : vector<128x128xf32>
    %cst_3 = arith.constant 0.000000e+00 : f32
    %12 = vector.broadcast %cst_3 : f32 to vector<128x128xf32>
    %13 = arith.select %4, %12, %11 : vector<128x128xi1>, vector<128x128xf32>
    %c0_4 = arith.constant 0 : index
    %c0_5 = arith.constant 0 : index
    %14 = vector.load %arg1[%c0_4, %c0_5] : memref<128x128xf32, #tpu.memory_space<vmem>>, vector<128x128xf32>
    %cst_6 = arith.constant dense<0.000000e+00> : vector<128x128xf32>
    %15 = tpu.matmul %13, %14, %cst_6 {dimension_numbers = #tpu.dot_dimension_numbers<[1], [0], [0], [1], [0, 0, 1, 1], [], []>, precision = #tpu.contract_precision<fp32>} : vector<128x128xf32>, vector<128x128xf32>, vector<128x128xf32> -> vector<128x128xf32>
    %cst_7 = arith.constant 0.000000e+00 : f32
    %16 = vector.broadcast %cst_7 : f32 to vector<128x128xf32>
    %17 = arith.subf %16, %15 : vector<128x128xf32>
    %18 = math.exp %17 : vector<128x128xf32>
    %cst_8 = arith.constant 0.000000e+00 : f32
    %19 = vector.broadcast %cst_8 : f32 to vector<128x128xf32>
    %20 = arith.subf %19, %11 : vector<128x128xf32>
    %21 = math.exp %20 : vector<128x128xf32>
    %cst_9 = arith.constant 1.000000e+00 : f32
    %22 = vector.broadcast %cst_9 : f32 to vector<128x128xf32>
    %23 = arith.subf %22, %21 : vector<128x128xf32>
    %24 = arith.mulf %18, %23 : vector<128x128xf32>
    %c0_10 = arith.constant 0 : index
    %c0_11 = arith.constant 0 : index
    %c0_12 = arith.constant 0 : index
    %25 = vector.load %arg4[%c0_10, %c0_11, %c0_12] : memref<3x128x128xbf16, #tpu.memory_space<vmem>>, vector<3x128x128xbf16>
    %26 = arith.extf %25 : vector<3x128x128xbf16> to vector<3x128x128xf32>
    %27 = vector.shape_cast %24 : vector<128x128xf32> to vector<1x128x128xf32>
    %28 = vector.broadcast %27 : vector<1x128x128xf32> to vector<3x128x128xf32>
    %29 = arith.mulf %26, %28 : vector<3x128x128xf32>
    %cst_13 = arith.constant dense<0.000000e+00> : vector<3x128xf32>
    %30 = vector.multi_reduction <add>, %29, %cst_13 [2] : vector<3x128x128xf32> to vector<3x128xf32>
    %31 = arith.mulf %0, %24 : vector<128x128xf32>
    %32 = vector.shape_cast %31 : vector<128x128xf32> to vector<1x128x128xf32>
    %cst_14 = arith.constant dense<0.000000e+00> : vector<1x128xf32>
    %33 = vector.multi_reduction <add>, %32, %cst_14 [2] : vector<1x128x128xf32> to vector<1x128xf32>
    %c0_15 = arith.constant 0 : index
    %c0_16 = arith.constant 0 : index
    %34 = vector.load %arg5[%c0_15, %c0_16] : memref<8x128xf32, #tpu.memory_space<vmem>>, vector<3x128xf32>
    tpu.vector_store %arg5[%c0_15, %c0_16], %30 {strides = array<i32>} : memref<8x128xf32, #tpu.memory_space<vmem>>, vector<3x128xf32>,
    %c3 = arith.constant 3 : index
    %c0_17 = arith.constant 0 : index
    %35 = vector.load %arg5[%c3, %c0_17] : memref<8x128xf32, #tpu.memory_space<vmem>>, vector<1x128xf32>
    tpu.vector_store %arg5[%c3, %c0_17], %33 {strides = array<i32>} : memref<8x128xf32, #tpu.memory_space<vmem>>, vector<1x128xf32>,
    %cst_18 = arith.constant 0.000000e+00 : f32
    %36 = vector.broadcast %cst_18 : f32 to vector<4x128xf32>
    %c4 = arith.constant 4 : index
    %c0_19 = arith.constant 0 : index
    %37 = vector.load %arg5[%c4, %c0_19] : memref<8x128xf32, #tpu.memory_space<vmem>>, vector<4x128xf32>
    tpu.vector_store %arg5[%c4, %c0_19], %36 {strides = array<i32>} : memref<8x128xf32, #tpu.memory_space<vmem>>, vector<4x128xf32>,
    return
  }
  func.func @transform_0(%arg0: i32) -> (i32, i32) {
    %c0_i32 = arith.constant 0 : i32
    %c0_i32_0 = arith.constant 0 : i32
    %c0_i32_1 = arith.constant 0 : i32
    return %c0_i32, %c0_i32_0 : i32, i32
  }
  func.func @transform_1(%arg0: i32) -> (i32, i32) {
    %c0_i32 = arith.constant 0 : i32
    %c0_i32_0 = arith.constant 0 : i32
    return %arg0, %c0_i32 : i32, i32
  }
  func.func @transform_2(%arg0: i32) -> (i32, i32) {
    %c0_i32 = arith.constant 0 : i32
    %c0_i32_0 = arith.constant 0 : i32
    return %arg0, %c0_i32 : i32, i32
  }
  func.func @transform_3(%arg0: i32) -> (i32, i32, i32) {
    %c0_i32 = arith.constant 0 : i32
    %c0_i32_0 = arith.constant 0 : i32
    %c0_i32_1 = arith.constant 0 : i32
    return %c0_i32, %arg0, %c0_i32_0 : i32, i32, i32
  }
  func.func @transform_4(%arg0: i32) -> (i32, i32) {
    %c0_i32 = arith.constant 0 : i32
    %c0_i32_0 = arith.constant 0 : i32
    return %c0_i32, %arg0 : i32, i32
  }
}

</mosaic_0001>

<bundles_post_ra>
// kernel: tpu_custom_call.1
= control target key start
LH: loop header
LB: loop body
LE: loop exit
PB: predicated region body
PF: predicated region fallthrough
CT: control target
= control target key end

     0   :  { %s3975_s0 = inlined_call_operand.hbm [shape: f32[128,128], index: 0, kind: input, shape index: {}]   ;;  %s3976_s1 = inlined_call_operand.hbm [shape: f32[256,128], index: 1, kind: input, shape index: {}]   ;;  %s3977_s2 = inlined_call_operand.hbm [shape: f32[256,128], index: 2, kind: input, shape index: {}]   ;;  %s3978_s3 = inlined_call_operand.hbm [shape: bf16[3,256,128], index: 3, kind: input, shape index: {}]   ;;  %s3979_s4 = inlined_call_operand.hbm [shape: f32[8,256], index: 4, kind: output, shape index: {}]  }
   0x1   :  { %4000 = sst [smem:[#allocation22_spill]] %s3975_s0 }
   0x2   :  { %9 = vsyncpa [#allocation3], 0 }
   0x3   :  { %10 = vsyncpa [#allocation6], 0 }
   0x4   :  { %12 = vsyncpa [#allocation6 + $0x1], 0 }
   0x5   :  { %13 = vsyncpa [#allocation9], 0 }
   0x6   :  { %15 = vsyncpa [#allocation9 + $0x1], 0 }
   0x7   :  { %16 = vsyncpa [#allocation4], 0 }
   0x8   :  { %18 = vsyncpa [#allocation4 + $0x1], 0  ;;  %s2664_s15 = smov 0   ;;  %s2666_s16 = smov 0  }
   0x9   :  { %s2668_s17 = smov 0   ;;  %s2670_s18 = smov 0  }
   0xa LB: > { %4001 = sst [smem:[#allocation18_spill]] %s2620_s17  ;;  %s2685_s19 = sadd.s32 4294967295, %s2624_s18   ;;  %s2624_s18 = sphi %s2670_s18, %s4028_s18   ;;  %s2620_s17 = sphi %s2668_s17, %s4030_s17   ;;  %s2616_s16 = sphi %s2666_s16, %s4032_s16   ;;  %s2612_s15 = sphi %s2664_s15, %s4031_s15  }
   0xb   : > { %s2130_s20 = sadd.s32 4294967294, %s2624_s18   ;;  %s2689_s21 = sadd.s32 1, %s2624_s18  }
   0xc   : > { %4002 = sst [smem:[#allocation19_spill]] %s2689_s21  ;;  %s52_s22 = sadd.s32 1, %s2620_s17 }
   0xd   : > { %s49_s23 = ssub.s32 %s2624_s18, %s2689_s21  ;;  %p59_p0 = scmp.ne.s32.totalorder %s2620_s17, %s2616_s16 }
   0xe   : > { %p50_p1 = scmp.eq.s32.totalorder %s49_s23, 0  ;;  %p60_p2 = scmp.eq.s32.totalorder %s2624_s18, 0 }
   0xf   : > { %p65_p3 = scmp.ne.s32.totalorder %s2616_s16, %s2612_s15  ;;  %p66_p4 = scmp.eq.s32.totalorder %s2685_s19, 0 }
  0x10   : > { %s2701_s24 = scalar_select %p50_p1, %s2620_s17, %s52_s22  }
  0x11   : > { %p2703_p5 = por %p60_p2, %p59_p0  ;;  %p2709_p6 = por %p66_p4, %p65_p3 }
  0x12   : > { %4003 = sst [smem:[#allocation20_spill]] %s2701_s24  ;;  %p141_p7 = scmp.eq.s32.totalorder %s2685_s19, 1 }
  0x13   : > { %p147_p8 = scmp.eq.s32.totalorder %s2130_s20, 1  ;;  %p2131_p9 = scmp.ge.s32.totalorder %s2624_s18, 1 }
  0x14   : > { %p154_p10 = scmp.lt.s32.totalorder %s2624_s18, 3  ;;  %p2716_p11 = por %p141_p7, %p59_p0 }
  0x15   : > { %p2720_p12 = por %p147_p8, %p65_p3  ;;  %s4010_s0 = sld [smem:[#allocation22_spill]] }
  0x16   : > { %p2724_p13 = pnand %p2131_p9, %p154_p10  ;;  %s2626_s7 = smov [#allocation2]  }
  0x17   : > { %s4007_s28 = scalar_select %p2720_p12, 1, 0 }
  0x18   : > { %p2328_p1 = pneg %p2724_p13  ;;  %s167_s8 = sshll.u32 %s2626_s7, 4  ;;  %s168_s8 = int_to_ptr.vmem [resolvable:$true] %s167_s8 }
  0x19   : > { %4008 = sst [smem:[#allocation21_spill]] %s4007_s28  ;;  %s2627_s9 = smov 128  }
  0x1a   : > { %p2329_p0 = pnand %p2328_p1, %p66_p4  ;;  %s2628_s10 = smov 8  }
  0x1b   : > { %s165_s6 = sshll.u32 %s4010_s0, 4  ;;  %p2133_p2 = scmp.ge.s32.totalorder %s2624_s18, 2  ;;  %s166_s6 = int_to_ptr.hbm [resolvable:$true] %s165_s6 }
  0x1c   : > { %2331 = dma.hbm_to_vmem [thread:$0]  (!%p2329_p0), %s166_s6, 2048, %s168_s8, [#allocation3], %s2627_s9, %s2627_s9, %s2628_s10  }
  0x1d   : > { %177 = sbr.rel (%p2133_p2) target bundleno = 74 (0x4a), region = 20  ;;  %s181_s11 = sand.u32 (!%p2133_p2), 1, %s2624_s18  }
  0x1e   : > { %s2740_s12 = sand.u32 (!%p2133_p2), 1, %s2620_s17   ;;  %s2153_s14 = sshll.u32 (!%p2133_p2), %s2624_s18, 7 }
  0x1f   : > { %s2134_s13 = sshll.u32 (!%p2133_p2), %s2740_s12, 7  ;;  %s190_s23 = scalar_lea.hbm (!%p2133_p2), %s3976_s1, %s2153_s14 }
  0x20   : > { %s185_s30 = scalar_lea.vmem (!%p2133_p2), [#allocation5], %s2134_s13  ;;  %s191_s6 = sshll.u32 (!%p2133_p2), %s190_s23, 4  ;;  %s192_s6 = int_to_ptr.hbm [resolvable:$true] %s191_s6 }
  0x21   : > { %s193_s5 = sshll.u32 (!%p2133_p2), %s185_s30, 4  ;;  %s2747_s7 = scalar_lea.sflag (!%p2133_p2), [#allocation6], %s181_s11  ;;  %s194_s5 = int_to_ptr.vmem [resolvable:$true] %s193_s5 }
  0x22   : > { %s2494_s8 = sshra.s32 %s192_s6, 4  ;;  %s2500_s24 = scalar_lea.hbm %s3976_s1, 256  ;;  %s2495_s8 = int_to_ptr.hbm [resolvable:$true] %s2494_s8 }
  0x23   : > { %s2496_s9 = scalar_lea.hbm %s2495_s8, 128  ;;  %p2501_p9 = scmp.lt.s32.totalorder %s2495_s8, %s3976_s1 }
  0x24   : > { %p2497_p3 = scmp.ne.s32.totalorder %s2495_s8, %s2496_s9  ;;  %p2502_p10 = scmp.lt.s32.totalorder %s2500_s24, %s2496_s9 }
  0x26   : > { %p2498_p7 = pnand %p2497_p3, %p2703_p5  ;;  %p2503_p1 = por %p2502_p10, %p2501_p9 }
  0x28   : > { %p2499_p8 = pneg %p2498_p7 }
  0x2a   : > { %p2504_p0 = pnand %p2503_p1, %p2499_p8 }
  0x2c   : > { %2507 = shalt.err (!%p2504_p0)
}
  0x2d   : > { %s2629_s11 = smov 128   ;;  %s2630_s23 = smov 8  }
  0x2e   : > { %2311 = dma.hbm_to_vmem [thread:$0]  (%p2703_p5), %s192_s6, 2048, %s194_s5, %s2747_s7, %s2629_s11, %s2629_s11, %s2630_s23  }
  0x2f   : > { %s212_s0 = scalar_lea.hbm %s3977_s2, %s2153_s14  ;;  %s207_s10 = scalar_lea.vmem [#allocation7], %s2134_s13 }
  0x30   : > { %s215_s21 = sshll.u32 %s207_s10, 4  ;;  %s213_s28 = sshll.u32 %s212_s0, 4  ;;  %s216_s21 = int_to_ptr.vmem [resolvable:$true] %s215_s21  ;;  %s214_s28 = int_to_ptr.hbm [resolvable:$true] %s213_s28 }
  0x31   : > { %s2522_s24 = sshra.s32 %s214_s28, 4  ;;  %s2528_s5 = scalar_lea.hbm %s3977_s2, 256  ;;  %s2523_s24 = int_to_ptr.hbm [resolvable:$true] %s2522_s24 }
  0x32   : > { %s2524_s8 = scalar_lea.hbm %s2523_s24, 128  ;;  %p2529_p9 = scmp.lt.s32.totalorder %s2523_s24, %s3977_s2 }
  0x33   : > { %p2525_p3 = scmp.ne.s32.totalorder %s2523_s24, %s2524_s8  ;;  %p2530_p10 = scmp.lt.s32.totalorder %s2528_s5, %s2524_s8 }
  0x35   : > { %p2526_p7 = pnand %p2525_p3, %p2703_p5  ;;  %p2531_p1 = por %p2530_p10, %p2529_p9 }
  0x37   : > { %p2527_p8 = pneg %p2526_p7 }
  0x39   : > { %p2532_p0 = pnand %p2531_p1, %p2527_p8 }
  0x3b   : > { %2535 = shalt.err (!%p2532_p0)
}
  0x3c   : > { %2312 = dma.hbm_to_vmem [thread:$0]  (%p2703_p5), %s214_s28, 2048, %s216_s21, %s2747_s7, %s2629_s11, %s2629_s11, %s2630_s23  }
  0x3d   : > { %s2307_s17 = smul.u32 192, %s2740_s12  ;;  %s2155_s13 = sshll.u32 %s2624_s18, 6 }
  0x3e   : > { %s234_s0 = scalar_lea.hbm %s3978_s3, %s2155_s13  ;;  %s2631_s28 = smov 2048  }
  0x3f   : > { %s2313_s10 = scalar_select %p2703_p5, [#allocation0], [#allocation13] }
  0x40   : > { %s247_s24 = sshll.u32 %s234_s0, 4  ;;  %s229_s8 = scalar_lea.vmem [#allocation8], %s2307_s17  ;;  %s248_s24 = int_to_ptr.hbm [resolvable:$true] %s247_s24 }
  0x41   : > { %s249_s9 = sshll.u32 %s229_s8, 4  ;;  %s239_s21 = sld [smem:[%s2313_s10]]   ;;  %s250_s9 = int_to_ptr.vmem [resolvable:$true] %s249_s9 }
  0x42   : > { %2314 = sst [smem:[#allocation12]] (%p2703_p5), %s2631_s28  ;;  %s2632_s7 = smov 1024  }
  0x43   : > { %2315 = sst [smem:[#allocation12 + $0x1]] (%p2703_p5), %s2632_s7  ;;  %s2633_s11 = smov 16  }
  0x44   : > { %2316 = sst [smem:[#allocation12 + $0x2]] (%p2703_p5), %s2633_s11  ;;  %s2634_s23 = smov 64  }
  0x45   : > { %2317 = sst [smem:[#allocation12 + $0x3]] (%p2703_p5), %s2634_s23  ;;  %s2635_s6 = smov 4  }
  0x46   : > { %2318 = sst [smem:[#allocation12 + $0x4]] (%p2703_p5), %s2634_s23  ;;  %s226_s22 = scalar_lea.sflag [#allocation9], %s2740_s12 }
  0x47   : > { %s2142_s20 = sshll.u32 %s239_s21, 26  ;;  %2319 = sst [smem:[#allocation12 + $0x5]] (%p2703_p5), %s2635_s6 }
  0x48   : > { %s2143_s5 = sadd.s32 134217728, %s2142_s20  ;;  %s2636_s17 = smov [#allocation11]  }
  0x49   : > { %2320 = dma.general (%p2703_p5), %s248_s24, 3072, %s250_s9, %s226_s22, %s2636_s17, [#allocation12], %s2143_s5, 0  }
  0x4a PF: > { %274 = sbr.rel (%p2724_p13) target bundleno = 732 (0x2dc), region = 36 }
  0x4f   : > { %2595 = dma.done.wait (%p66_p4), [#allocation3], 2048  }
  0x50   : > { %2597 = vsyncadd (%p66_p4), [#allocation3], 4294965248  ;;  %s281_s13 = sand.u32 1, %s2685_s19   ;;  %s2804_s14 = sand.u32 1, %s2616_s16  }
  0x51   : > { %s2146_s12 = sshll.u32 %s2804_s14, 7  ;;  %s282_s25 = scalar_lea.sflag [#allocation6], %s281_s13 }
  0x52   : > { %s2807_s30 = scalar_lea.vmem [#allocation5], %s2146_s12 }
  0x53   : > { %2599 = dma.done.wait (%p2709_p6), %s282_s25, 4096  }
  0x54   : > { %2601 = vsyncadd (%p2709_p6), %s282_s25, 4294963200  ;;  %s2308_s29 = smul.u32 192, %s2804_s14  ;;  %s2814_s0 = scalar_lea.vmem [#allocation7], %s2146_s12 }
  0x55   : > { %s302_s10 = scalar_lea.sflag [#allocation9], %s2804_s14 }
  0x56   : > { %s2817_s24 = scalar_lea.vmem [#allocation8], %s2308_s29 }
  0x57   : > { %2603 = dma.done.wait (%p2709_p6), %s302_s10, 3072  }
  0x58   : > { %2605 = vsyncadd (%p2709_p6), %s302_s10, 4294964224  ;;  %v2824_v0 = vld [vmem:[%s2807_s30 + $0x40] sm:$0xff]  ;;  %s2637_s8 = smov 127   ;;  %v2834_v2 = vld [vmem:[%s2807_s30 + $0x8] sm:$0xff]  ;;  %vm443_vm0 = vcmask 1039360   ;;  %vm1813_vm2 = vcmask 130112  }
  0x59   : > { %v2827_v1 = vld [vmem:[%s2807_s30] sm:$0xff]  ;;  %411 = vrot.lane.b32.xlu0 %v2824_v0, %s2637_s8  ;;  %397 = vrot.lane.b32.xlu2 %v2834_v2, %s2637_s8  ;;  %v2839_v3 = vld [vmem:[%s2807_s30 + $0x48] sm:$0xff]  ;;  %v539_v6 = vld [vmem:[#allocation2 + $0x78] sm:$0xff]  ;;  %vm1817_vm3 = vcmask 195712   ;;  %vm1821_vm4 = vcmask 261312   ;;  %vm1825_vm5 = vcmask 326912  }
  0x5a   : > { %395 = vrot.lane.b32.xlu1 %v2827_v1, %s2637_s8  ;;  %v2842_v4 = vld [vmem:[%s2807_s30 + $0x50] sm:$0xff]  ;;  %v2845_v5 = vld [vmem:[%s2807_s30 + $0x58] sm:$0xff]  ;;  %v2851_v7 = vand.u32 4294901760, %v539_v6  ;;  %v537_v9 = vld [vmem:[#allocation2 + $0x68] sm:$0xff]  ;;  %vm1829_vm6 = vcmask 392512   ;;  %vm1833_vm7 = vcmask 458112  }
  0x5b   : > { %v538_v8 = vld [vmem:[#allocation2 + $0x70] sm:$0xff]  ;;  %v536_v10 = vld [vmem:[#allocation2 + $0x60] sm:$0xff]  ;;  %v2857_v12 = vand.u32 4294901760, %v537_v9  ;;  %v535_v14 = vld [vmem:[#allocation2 + $0x58] sm:$0xff]  ;;  %vm1837_vm8 = vcmask 523712   ;;  %vm1841_vm9 = vcmask 589312  }
  0x5c   : > { %v2855_v11 = vand.u32 4294901760, %v538_v8  ;;  %v2859_v13 = vand.u32 4294901760, %v536_v10  ;;  %v534_v15 = vld [vmem:[#allocation2 + $0x50] sm:$0xff]  ;;  %v533_v16 = vld [vmem:[#allocation2 + $0x48] sm:$0xff]  ;;  %v2862_v17 = vsub.f32 %v539_v6, %v2851_v7  ;;  %541 = vmatpush.msra.mxu0 %v2851_v7  ;;  %2275 = vmatpush.msra.mxu2 %v2851_v7  ;;  %v2866_v18 = vand.u32 4294901760, %v535_v14  ;;  %v532_v21 = vld [vmem:[#allocation2 + $0x40] sm:$0xff] }
  0x5d   : > { %v2868_v19 = vand.u32 4294901760, %v534_v15  ;;  %v2870_v20 = vand.u32 4294901760, %v533_v16  ;;  %v2876_v23 = vsub.f32 %v537_v9, %v2857_v12  ;;  %v2882_v25 = vld [vmem:[%s2807_s30 + $0x10] sm:$0xff]  ;;  %v2885_v26 = vld [vmem:[%s2807_s30 + $0x60] sm:$0xff]  ;;  %v2896_v30 = vand.u32 4294901760, %v532_v21  ;;  %v2902_v34 = vld [vmem:[%s2807_s30 + $0x18] sm:$0xff] }
  0x5e   : > { %v2873_v22 = vsub.f32 %v538_v8, %v2855_v11  ;;  %v2879_v24 = vsub.f32 %v536_v10, %v2859_v13  ;;  %v703_v27 = vand.u32 4294901760, %v2862_v17  ;;  %v2889_v28 = vsub.f32 %v535_v14, %v2866_v18  ;;  %543 = vmatpush.msra.mxu0 %v2855_v11  ;;  %2276 = vmatpush.msra.mxu2 %v2855_v11  ;;  %v531_v40 = vld [vmem:[#allocation2 + $0x38] sm:$0xff]  ;;  %v530_v45 = vld [vmem:[#allocation2 + $0x30] sm:$0xff]  ;;  %v529_v46 = vld [vmem:[#allocation2 + $0x28] sm:$0xff]  ;;  %s2148_s26 = sshll.u32 %s2804_s14, 3  ;;  %s2150_s21 = sshll.u32 %s2685_s19, 3 }
  0x5f   : > { %v2894_v29 = vsub.f32 %v534_v15, %v2868_v19  ;;  %v715_v32 = vand.u32 4294901760, %v2876_v23  ;;  %v2911_v37 = vsub.f32 %v533_v16, %v2870_v20  ;;  %v2930_v44 = vsub.f32 %v532_v21, %v2896_v30  ;;  %v2947_v54 = vld [vmem:[%s2807_s30 + $0x68] sm:$0xff]  ;;  %v2950_v55 = vld [vmem:[%s2807_s30 + $0x20] sm:$0xff]  ;;  %v2965_v61 = vld [vmem:[%s2807_s30 + $0x70] sm:$0xff]  ;;  %s3859_s9 = scalar_lea.vmem [#allocation10], %s2148_s26  ;;  %s2000_s11 = scalar_lea.hbm %s3979_s4, %s2150_s21 }
  0x60   : > { %v709_v31 = vand.u32 4294901760, %v2873_v22  ;;  %v721_v33 = vand.u32 4294901760, %v2879_v24  ;;  %v704_v35 = vsub.f32 %v2862_v17, %v703_v27  ;;  %v727_v36 = vand.u32 4294901760, %v2889_v28  ;;  %545 = vmatpush.msra.mxu0 %v2857_v12  ;;  %2277 = vmatpush.msra.mxu2 %v2857_v12  ;;  %s2002_s19 = sshll.u32 %s3859_s9, 4  ;;  %s2004_s23 = sshll.u32 %s2000_s11, 4  ;;  %s2003_s19 = int_to_ptr.vmem [resolvable:$true] %s2002_s19  ;;  %s2005_s23 = int_to_ptr.hbm [resolvable:$true] %s2004_s23 }
  0x61   : > { %413 = vrot.lane.b32.xlu0 %v2839_v3, %s2637_s8  ;;  %417 = vrot.lane.b32.xlu2 %v2845_v5, %s2637_s8  ;;  %v716_v39 = vsub.f32 %v2876_v23, %v715_v32  ;;  %v733_v43 = vand.u32 4294901760, %v2894_v29  ;;  %v739_v50 = vand.u32 4294901760, %v2911_v37  ;;  %v2938_v51 = vand.u32 4294901760, %v531_v40  ;;  %s1990_s20 = scalar_lea.sflag [#allocation4], %s2804_s14  ;;  %s2564_s5 = sshra.s32 %s2005_s23, 4  ;;  %s2565_s5 = int_to_ptr.hbm [resolvable:$true] %s2564_s5 }
  0x62   : > { %415 = vrot.lane.b32.xlu1 %v2842_v4, %s2637_s8  ;;  %v710_v38 = vsub.f32 %v2873_v22, %v709_v31  ;;  %v705_v41 = vand.u32 4294901760, %v704_v35  ;;  %v722_v42 = vsub.f32 %v2879_v24, %v721_v33  ;;  %547 = vmatpush.msra.mxu0 %v2859_v13  ;;  %v728_v49 = vsub.f32 %v2889_v28, %v727_v36  ;;  %v2992_v35 = vld [vmem:[%s2807_s30 + $0x28] sm:$0xff]  ;;  %s2566_s6 = scalar_lea.hbm %s2565_s5, 8  ;;  %s2570_s13 = scalar_lea.hbm %s3979_s4, 16 }
  0x63   : > { %2278 = vmatpush.msra.mxu2 %v2859_v13  ;;  %v717_v48 = vand.u32 4294901760, %v716_v39  ;;  %v2942_v52 = vand.u32 4294901760, %v530_v45  ;;  %v2944_v53 = vand.u32 4294901760, %v529_v46  ;;  %v734_v57 = vsub.f32 %v2894_v29, %v733_v43  ;;  %p2567_p4 = scmp.ne.s32.totalorder %s2565_s5, %s2566_s6  ;;  %p2571_p13 = scmp.lt.s32.totalorder %s2565_s5, %s3979_s4 }
  0x64   : > { %v711_v47 = vand.u32 4294901760, %v710_v38  ;;  %706 = vmatpush.msra.mxu1 %v705_v41  ;;  %2291 = vmatpush.msra.mxu3 %v705_v41  ;;  %v723_v56 = vand.u32 4294901760, %v722_v42  ;;  %v745_v58 = vand.u32 4294901760, %v2930_v44  ;;  %v2957_v59 = vsub.f32 %v531_v40, %v2938_v51  ;;  %v2995_v38 = vld [vmem:[%s2807_s30 + $0x78] sm:$0xff]  ;;  %v3003_v41 = vld [vmem:[%s2807_s30 + $0x30] sm:$0xff]  ;;  %p2572_p3 = scmp.lt.s32.totalorder %s2570_s13, %s2566_s6 }
  0x65   : > { %549 = vmatpush.msra.mxu0 %v2866_v18  ;;  %2279 = vmatpush.msra.mxu2 %v2866_v18  ;;  %v2962_v60 = vsub.f32 %v530_v45, %v2942_v52  ;;  %v729_v62 = vand.u32 4294901760, %v728_v49  ;;  %v740_v63 = vsub.f32 %v2911_v37, %v739_v50  ;;  %v2972_v8 = vsub.f32 %v529_v46, %v2944_v53  ;;  %v528_v49 = vld [vmem:[#allocation2 + $0x20] sm:$0xff]  ;;  %p2568_p5 = pnand %p2567_p4, %p2716_p11 }
  0x66   : > { %712 = vmatpush.msra.mxu1 %v711_v47  ;;  %2292 = vmatpush.msra.mxu3 %v711_v47  ;;  %v3988_v6 = vand.u32 4294901760, %v2957_v59  ;;  %v735_v9 = vand.u32 4294901760, %v734_v57  ;;  %v746_v10 = vsub.f32 %v2930_v44, %v745_v58  ;;  %v527_v57 = vld [vmem:[#allocation2 + $0x18] sm:$0xff]  ;;  %vm1845_vm10 = vcmask 654912   ;;  %p2573_p7 = por %p2572_p3, %p2571_p13 }
  0x67   : > { %551 = vmatpush.msra.mxu0 %v2868_v19  ;;  %2280 = vmatpush.msra.mxu2 %v2868_v19  ;;  %v3986_v14 = vand.u32 4294901760, %v2962_v60  ;;  %v741_v15 = vand.u32 4294901760, %v740_v63  ;;  %v3984_v21 = vand.u32 4294901760, %v2972_v8  ;;  %v3029_v63 = vand.u32 4294901760, %v527_v57  ;;  %p2569_p6 = pneg %p2568_p5 }
  0x68   : > { %718 = vmatpush.msra.mxu1 %v717_v48  ;;  %2293 = vmatpush.msra.mxu3 %v717_v48  ;;  %v752_v16 = vsub.f32 %v2957_v59, %v3988_v6  ;;  %v747_v39 = vand.u32 4294901760, %v746_v10  ;;  %v3018_v48 = vld [vmem:[%s2807_s30 + $0x38] sm:$0xff]  ;;  %vm1849_vm11 = vcmask 720512   ;;  %vm1853_vm12 = vcmask 786112  }
  0x69   : > { %399 = vrot.lane.b32.xlu0 %v2882_v25, %s2637_s8  ;;  %401 = vrot.lane.b32.xlu2 %v2902_v34, %s2637_s8  ;;  %v758_v40 = vsub.f32 %v2962_v60, %v3986_v14  ;;  %v764_v45 = vsub.f32 %v2972_v8, %v3984_v21  ;;  %vm1857_vm13 = vcmask 851712   ;;  %vm1861_vm14 = vcmask 917312   ;;  %p2574_p8 = pnand %p2573_p7, %p2569_p6 }
  0x6a   : > { %419 = vrot.lane.b32.xlu1 %v2885_v26, %s2637_s8  ;;  %724 = vmatpush.msra.mxu1 %v723_v56  ;;  %v753_v42 = vand.u32 4294901760, %v752_v16  ;;  %vm1865_vm15 = vcmask 982912  }
  0x6b   : > { %2294 = vmatpush.msra.mxu3 %v723_v56  ;;  %553 = vmatpush.msra.mxu0 %v2870_v20  ;;  %v759_v46 = vand.u32 4294901760, %v758_v40  ;;  %v765_v47 = vand.u32 4294901760, %v764_v45  ;;  %v3024_v56 = vand.u32 4294901760, %v528_v49 }
  0x6c   : > { %730 = vmatpush.msra.mxu1 %v729_v62  ;;  %2281 = vmatpush.msra.mxu2 %v2870_v20 }
  0x6d   : > { %2295 = vmatpush.msra.mxu3 %v729_v62  ;;  %555 = vmatpush.msra.mxu0 %v2896_v30  ;;  %v3027_v62 = vsub.f32 %v528_v49, %v3024_v56 }
  0x6e   : > { %736 = vmatpush.msra.mxu1 %v735_v9  ;;  %2282 = vmatpush.msra.mxu2 %v2896_v30 }
  0x6f   : > { %2296 = vmatpush.msra.mxu3 %v735_v9  ;;  %557 = vmatpush.msra.mxu0 %v2938_v51  ;;  %v526_v9 = vld [vmem:[#allocation2 + $0x10] sm:$0xff]  ;;  %v3985_v10 = vand.u32 4294901760, %v3027_v62 }
  0x70   : > { %742 = vmatpush.msra.mxu1 %v741_v15  ;;  %2283 = vmatpush.msra.mxu2 %v2938_v51  ;;  %v3037_v16 = vand.u32 4294901760, %v526_v9 }
  0x71   : > { %421 = vrot.lane.b32.xlu0 %v2947_v54, %s2637_s8  ;;  %423 = vrot.lane.b32.xlu2 %v2965_v61, %s2637_s8  ;;  %v770_v40 = vsub.f32 %v3027_v62, %v3985_v10 }
  0x72   : > { %403 = vrot.lane.b32.xlu1 %v2950_v55, %s2637_s8  ;;  %2297 = vmatpush.msra.mxu3 %v741_v15  ;;  %v3035_v15 = vsub.f32 %v527_v57, %v3029_v63  ;;  %v3046_v45 = vsub.f32 %v526_v9, %v3037_v16 }
  0x73   : > { %748 = vmatpush.msra.mxu1 %v747_v39  ;;  %559 = vmatpush.msra.mxu0 %v2942_v52  ;;  %v771_v49 = vand.u32 4294901760, %v770_v40 }
  0x74   : > { %2298 = vmatpush.msra.mxu3 %v747_v39  ;;  %2284 = vmatpush.msra.mxu2 %v2942_v52  ;;  %v525_v39 = vld [vmem:[#allocation2 + $0x8] sm:$0xff]  ;;  %v3989_v21 = vand.u32 4294901760, %v3046_v45 }
  0x75   : > { %754 = vmatpush.msra.mxu1 %v753_v42  ;;  %561 = vmatpush.msra.mxu0 %v2944_v53 }
  0x76   : > { %2299 = vmatpush.msra.mxu3 %v753_v42  ;;  %2285 = vmatpush.msra.mxu2 %v2944_v53  ;;  %v3987_v42 = vand.u32 4294901760, %v3035_v15  ;;  %v782_v40 = vsub.f32 %v3046_v45, %v3989_v21 }
  0x77   : > { %760 = vmatpush.msra.mxu1 %v759_v46  ;;  %563 = vmatpush.msra.mxu0 %v3024_v56 }
  0x78   : > { %2300 = vmatpush.msra.mxu3 %v759_v46  ;;  %2286 = vmatpush.msra.mxu2 %v3024_v56  ;;  %v3048_v46 = vand.u32 4294901760, %v525_v39  ;;  %v776_v57 = vsub.f32 %v3035_v15, %v3987_v42 }
  0x79   : > { %405 = vrot.lane.b32.xlu0 %v2992_v35, %s2637_s8  ;;  %407 = vrot.lane.b32.xlu2 %v3003_v41, %s2637_s8 }
  0x7a   : > { %425 = vrot.lane.b32.xlu1 %v2995_v38, %s2637_s8  ;;  %766 = vmatpush.msra.mxu1 %v765_v47  ;;  %v3057_v10 = vsub.f32 %v525_v39, %v3048_v46  ;;  %v777_v14 = vand.u32 4294901760, %v776_v57  ;;  %v783_v39 = vand.u32 4294901760, %v782_v40 }
  0x7b   : > { %2301 = vmatpush.msra.mxu3 %v765_v47  ;;  %565 = vmatpush.msra.mxu0 %v3029_v63  ;;  %v524_v47 = vld [vmem:[#allocation2] sm:$0xff] }
  0x7c   : > { %2287 = vmatpush.msra.mxu2 %v3029_v63  ;;  %v3061_v9 = vand.u32 4294901760, %v524_v47  ;;  %772 = vmatpush.msra.mxu1 %v771_v49  ;;  %v787_v42 = vand.u32 4294901760, %v3057_v10 }
  0x7d   : > { %567 = vmatpush.msra.mxu0 %v3037_v16  ;;  %2302 = vmatpush.msra.mxu3 %v771_v49 }
  0x7e   : > { %2288 = vmatpush.msra.mxu2 %v3037_v16  ;;  %v3068_v6 = vsub.f32 %v524_v47, %v3061_v9  ;;  %778 = vmatpush.msra.mxu1 %v777_v14  ;;  %v788_v49 = vsub.f32 %v3057_v10, %v787_v42 }
  0x7f   : > { %569 = vmatpush.msra.mxu0 %v3048_v46  ;;  %2303 = vmatpush.msra.mxu3 %v777_v14 }
  0x80   : > { %2289 = vmatpush.msra.mxu2 %v3048_v46  ;;  %v793_v57 = vand.u32 4294901760, %v3068_v6  ;;  %784 = vmatpush.msra.mxu1 %v783_v39  ;;  %v789_v47 = vand.u32 4294901760, %v788_v49 }
  0x81   : > { %409 = vrot.lane.b32.xlu0 %v3018_v48, %s2637_s8  ;;  %571 = vmatpush.msra.mxu0 %v3061_v9 }
  0x82   : > { %2290 = vmatpush.msra.mxu2 %v3061_v9  ;;  %2304 = vmatpush.msra.mxu3 %v783_v39  ;;  %v794_v21 = vsub.f32 %v3068_v6, %v793_v57 }
  0x83   : > { %1123 = vmatpush.msrb.mxu0 %v703_v27  ;;  %790 = vmatpush.msra.mxu1 %v789_v47 }
  0x84   : > { %864 = vmatpush.msrb.mxu2 %v2862_v17  ;;  %2305 = vmatpush.msra.mxu3 %v789_v47  ;;  %v795_v14 = vand.u32 4294901760, %v794_v21 }
  0x85   : > { %1127 = vmatpush.msrb.mxu0 %v709_v31  ;;  %v4016_v31 = vand.u32 4294901760, %v3046_v45 }
  0x86   : > { %867 = vmatpush.msrb.mxu2 %v2873_v22  ;;  %796 = vmatpush.msra.mxu1 %v795_v14 }
  0x87   : > { %1131 = vmatpush.msrb.mxu0 %v715_v32  ;;  %2306 = vmatpush.msra.mxu3 %v795_v14 }
  0x88   : > { %870 = vmatpush.msrb.mxu2 %v2876_v23  ;;  %1250 = vmatpush.msrb.mxu1 %v2851_v7 }
  0x89   : > { %992 = vmatpush.msrb.mxu3 %v2851_v7  ;;  %1135 = vmatpush.msrb.mxu0 %v721_v33  ;;  %v376_v7 = vlaneseq }
  0x8a   : > { %873 = vmatpush.msrb.mxu2 %v2879_v24  ;;  %1252 = vmatpush.msrb.mxu1 %v2855_v11 }
  0x8b   : > { %994 = vmatpush.msrb.mxu3 %v2855_v11  ;;  %1139 = vmatpush.msrb.mxu0 %v727_v36  ;;  %v368_v36 = vld [vmem:[%s2814_s0 + $0x40] sm:$0xff] }
  0x8c   : > { %876 = vmatpush.msrb.mxu2 %v2889_v28  ;;  %1254 = vmatpush.msrb.mxu1 %v2857_v12  ;;  %v4015_v28 = vand.u32 4294901760, %v3035_v15 }
  0x8d   : > { %996 = vmatpush.msrb.mxu3 %v2857_v12  ;;  %1143 = vmatpush.msrb.mxu0 %v733_v43  ;;  %v3117_v12 = vand.u32 127, %v376_v7  ;;  %v360_v43 = vld [vmem:[%s2814_s0] sm:$0xff] }
  0x8e   : > { %879 = vmatpush.msrb.mxu2 %v2894_v29  ;;  %1256 = vmatpush.msrb.mxu1 %v2859_v13 }
  0x8f   : > { %998 = vmatpush.msrb.mxu3 %v2859_v13  ;;  %1147 = vmatpush.msrb.mxu0 %v739_v50  ;;  %v4011_v13 = vand.u32 4294901760, %v2957_v59  ;;  %vm378_vm1 = vcmp.eq.s32.totalorder %v3117_v12, 127 }
  0x90   : > { %882 = vmatpush.msrb.mxu2 %v2911_v37  ;;  %1258 = vmatpush.msrb.mxu1 %v2866_v18 }
  0x91   : > { %1000 = vmatpush.msrb.mxu3 %v2866_v18  ;;  %1151 = vmatpush.msrb.mxu0 %v745_v58  ;;  %v4012_v18 = vand.u32 4294901760, %v2962_v60 }
  0x92   : > { %885 = vmatpush.msrb.mxu2 %v2930_v44  ;;  %1260 = vmatpush.msrb.mxu1 %v2868_v19 }
  0x93   : > { %1002 = vmatpush.msrb.mxu3 %v2868_v19  ;;  %1155 = vmatpush.msrb.mxu0 %v4011_v13  ;;  %v361_v19 = vld [vmem:[%s2814_s0 + $0x8] sm:$0xff] }
  0x94   : > { %888 = vmatpush.msrb.mxu2 %v2957_v59  ;;  %1262 = vmatpush.msrb.mxu1 %v2870_v20 }
  0x95   : > { %1004 = vmatpush.msrb.mxu3 %v2870_v20  ;;  %1159 = vmatpush.msrb.mxu0 %v4012_v18  ;;  %v4014_v20 = vand.u32 4294901760, %v3027_v62 }
  0x96   : > { %891 = vmatpush.msrb.mxu2 %v2962_v60  ;;  %1264 = vmatpush.msrb.mxu1 %v2896_v30 }
  0x97   : > { %1006 = vmatpush.msrb.mxu3 %v2896_v30 }
  0x98   : > { %894 = vmatpush.msrb.mxu2 %v2972_v8  ;;  %1266 = vmatpush.msrb.mxu1 %v2938_v51 }
  0x99   : > { %1008 = vmatpush.msrb.mxu3 %v2938_v51 }
  0x9a   : > { %897 = vmatpush.msrb.mxu2 %v3027_v62  ;;  %1268 = vmatpush.msrb.mxu1 %v2942_v52 }
  0x9b   : > { %1010 = vmatpush.msrb.mxu3 %v2942_v52 }
  0x9c   : > { %900 = vmatpush.msrb.mxu2 %v3035_v15  ;;  %1270 = vmatpush.msrb.mxu1 %v2944_v53 }
  0x9d   : > { %1012 = vmatpush.msrb.mxu3 %v2944_v53 }
  0x9e   : > { %903 = vmatpush.msrb.mxu2 %v3046_v45  ;;  %1272 = vmatpush.msrb.mxu1 %v3024_v56  ;;  %v369_v45 = vld [vmem:[%s2814_s0 + $0x48] sm:$0xff] }
  0x9f   : > { %1014 = vmatpush.msrb.mxu3 %v3024_v56 }
  0xa0   : > { %906 = vmatpush.msrb.mxu2 %v3057_v10  ;;  %1274 = vmatpush.msrb.mxu1 %v3029_v63 }
  0xa1   : > { %1016 = vmatpush.msrb.mxu3 %v3029_v63 }
  0xa2   : > { %909 = vmatpush.msrb.mxu2 %v3068_v6  ;;  %1276 = vmatpush.msrb.mxu1 %v3037_v16 }
  0xa3   : > { %1018 = vmatpush.msrb.mxu3 %v3037_v16 }
  0xa4   : > { %1278 = vmatpush.msrb.mxu1 %v3048_v46 }
  0xa5   : > { %1020 = vmatpush.msrb.mxu3 %v3048_v46  ;;  %v370_v46 = vld [vmem:[%s2814_s0 + $0x50] sm:$0xff] }
  0xa6   : > { %1280 = vmatpush.msrb.mxu1 %v3061_v9 }
  0xa7   : > { %1022 = vmatpush.msrb.mxu3 %v3061_v9 }
  0xb3   : > { %v398_v17 = vpop.permute.xlu2 %397 }
  0xb4   : > { %v445_v11 = vsel %vm443_vm0, %v398_v17, %v2834_v2 }
  0xb5   : > { %v461_v22 = vsub.f32 %v445_v11, %v2834_v2  ;;  %v4013_v2 = vand.u32 4294901760, %v2972_v8  ;;  %v363_v11 = vld [vmem:[%s2814_s0 + $0x18] sm:$0xff] }
  0xb7   : > { %1163 = vmatpush.msrb.mxu0 %v4013_v2  ;;  %v477_v24 = vsel %vm378_vm1, 1e+10, %v461_v22 }
  0xb8   : > { %v3144_v27 = vmul.f32 %v477_v24, %v361_v19 }
  0xb9   : > { %1167 = vmatpush.msrb.mxu0 %v4014_v20 }
  0xba   : > { %v509_v50 = vsel %vm378_vm1, 0.0, %v3144_v27 }
  0xbb   : > { %v418_v23 = vpop.permute.xlu2 %417  ;;  %1171 = vmatpush.msrb.mxu0 %v4015_v28  ;;  %v3183_v58 = vand.u32 4294901760, %v509_v50 }
  0xbc   : > { %v455_v63 = vsel %vm443_vm0, %v418_v23, %v2845_v5  ;;  %v371_v23 = vld [vmem:[%s2814_s0 + $0x58] sm:$0xff] }
  0xbd   : > { %1175 = vmatpush.msrb.mxu0 %v4016_v31 }
  0xbf   : > { %1179 = vmatpush.msrb.mxu0 %v787_v42  ;;  %v3209_v42 = vsub.f32 %v509_v50, %v3183_v58 }
  0xc1   : > { %1183 = vmatpush.msrb.mxu0 %v793_v57  ;;  %v582_v13 = vand.u32 4294901760, %v3209_v42 }
  0xc3   : > { %v402_v51 = vpop.permute.xlu2 %401  ;;  %v583_v50 = vsub.f32 %v3209_v42, %v582_v13 }
  0xc4   : > { %v447_v59 = vsel %vm443_vm0, %v402_v51, %v2902_v34 }
  0xc5   : > { %v463_v16 = vsub.f32 %v447_v59, %v2902_v34  ;;  %v471_v34 = vsub.f32 %v455_v63, %v2845_v5  ;;  %v584_v63 = vand.u32 4294901760, %v583_v50 }
  0xc7   : > { %v479_v9 = vsel %vm378_vm1, 1e+10, %v463_v16  ;;  %v487_v2 = vsel %vm378_vm1, 1e+10, %v471_v34 }
  0xc8   : > { %v3259_v31 = vmul.f32 %v479_v9, %v363_v11  ;;  %v364_v9 = vld [vmem:[%s2814_s0 + $0x20] sm:$0xff] }
  0xcb   : > { %v412_v29 = vpop.permute.xlu0 %411  ;;  %v424_v51 = vpop.permute.xlu2 %423 }
  0xcc   : > { %v396_v30 = vpop.permute.xlu1 %395  ;;  %v452_v32 = vsel %vm443_vm0, %v412_v29, %v2824_v0 }
  0xcd   : > { %v444_v33 = vsel %vm443_vm0, %v396_v30, %v2827_v1  ;;  %v468_v37 = vsub.f32 %v452_v32, %v2824_v0 }
  0xce   : > { %v460_v44 = vsub.f32 %v444_v33, %v2827_v1 }
  0xcf   : > { %v484_v0 = vsel %vm378_vm1, 1e+10, %v468_v37 }
  0xd0   : > { %v476_v1 = vsel %vm378_vm1, 1e+10, %v460_v44  ;;  %v3179_v52 = vmul.f32 %v484_v0, %v368_v36  ;;  %v362_v36 = vld [vmem:[%s2814_s0 + $0x10] sm:$0xff] }
  0xd1   : > { %v3181_v53 = vmul.f32 %v476_v1, %v360_v43  ;;  %v3267_v43 = vmul.f32 %v487_v2, %v371_v23 }
  0xd2   : > { %v516_v60 = vsel %vm378_vm1, 0.0, %v3179_v52 }
  0xd3   : > { %v508_v6 = vsel %vm378_vm1, 0.0, %v3181_v53  ;;  %v414_v8 = vpop.permute.xlu0 %413  ;;  %v3198_v56 = vand.u32 4294901760, %v516_v60 }
  0xd4   : > { %v3196_v21 = vand.u32 4294901760, %v508_v6  ;;  %v416_v62 = vpop.permute.xlu1 %415  ;;  %v453_v10 = vsel %vm443_vm0, %v414_v8, %v2839_v3 }
  0xd5   : > { %v454_v15 = vsel %vm443_vm0, %v416_v62, %v2842_v4  ;;  %v469_v40 = vsub.f32 %v453_v10, %v2839_v3  ;;  %830 = vmatmul.f32.vlgmr.msra.gmra.mxu3 %v3198_v56  ;;  %v3223_v57 = vsub.f32 %v516_v60, %v3198_v56  ;;  %v511_v60 = vsel %vm378_vm1, 0.0, %v3259_v31  ;;  %v372_v10 = vld [vmem:[%s2814_s0 + $0x60] sm:$0xff] }
  0xd6   : > { %798 = vmatmul.f32.vlgmr.msra.gmra.mxu1 %v3196_v21  ;;  %v470_v39 = vsub.f32 %v454_v15, %v2842_v4  ;;  %v3219_v49 = vsub.f32 %v508_v6, %v3196_v21  ;;  %v519_v62 = vsel %vm378_vm1, 0.0, %v3267_v43 }
  0xd7   : > { %v485_v3 = vsel %vm378_vm1, 1e+10, %v469_v40  ;;  %v3995_v7 = vand.u32 4294901760, %v3223_v57 }
  0xd8   : > { %v486_v47 = vsel %vm378_vm1, 1e+10, %v470_v39  ;;  %v574_v14 = vand.u32 4294901760, %v3219_v49  ;;  %v3231_v4 = vmul.f32 %v485_v3, %v369_v45  ;;  %v3303_v39 = vand.u32 4294901760, %v511_v60 }
  0xd9   : > { %v3233_v17 = vmul.f32 %v486_v47, %v370_v46  ;;  %v639_v20 = vsub.f32 %v3223_v57, %v3995_v7 }
  0xda   : > { %v575_v5 = vsub.f32 %v3219_v49, %v574_v14  ;;  %v517_v22 = vsel %vm378_vm1, 0.0, %v3231_v4 }
  0xdb   : > { %v518_v18 = vsel %vm378_vm1, 0.0, %v3233_v17  ;;  %v400_v19 = vpop.permute.xlu0 %399  ;;  %v3255_v28 = vand.u32 4294901760, %v517_v22  ;;  %v640_v44 = vand.u32 4294901760, %v639_v20  ;;  %v408_v20 = vpop.permute.xlu2 %407 }
  0xdc   : > { %v576_v24 = vand.u32 4294901760, %v575_v5  ;;  %v420_v29 = vpop.permute.xlu1 %419  ;;  %v446_v30 = vsel %vm443_vm0, %v400_v19, %v2882_v25  ;;  %v3263_v33 = vand.u32 4294901760, %v518_v18  ;;  %v3310_v5 = vand.u32 4294901760, %v519_v62 }
  0xdd   : > { %v456_v32 = vsel %vm443_vm0, %v420_v29, %v2885_v26  ;;  %v462_v37 = vsub.f32 %v446_v30, %v2882_v25  ;;  %834 = vmatmul.f32.gmra.mxu3 %v3255_v28  ;;  %v3275_v0 = vsub.f32 %v517_v22, %v3255_v28  ;;  %641 = vmatmul.f32.vlgmr.msra.gmra.mxu2 %v640_v44  ;;  %v373_v44 = vld [vmem:[%s2814_s0 + $0x68] sm:$0xff] }
  0xde   : > { %577 = vmatmul.f32.vlgmr.msra.gmra.mxu0 %v576_v24  ;;  %802 = vmatmul.f32.gmra.mxu1 %v3183_v58  ;;  %v472_v1 = vsub.f32 %v456_v32, %v2885_v26  ;;  %v3287_v8 = vsub.f32 %v518_v18, %v3263_v33  ;;  %v3325_v24 = vsub.f32 %v511_v60, %v3303_v39 }
  0xdf   : > { %v478_v25 = vsel %vm378_vm1, 1e+10, %v462_v37  ;;  %v3993_v6 = vand.u32 4294901760, %v3275_v0  ;;  %v3334_v32 = vsub.f32 %v519_v62, %v3310_v5  ;;  %v450_v37 = vsel %vm443_vm0, %v408_v20, %v3003_v41 }
  0xe0   : > { %v3280_v59 = vmul.f32 %v478_v25, %v362_v36  ;;  %v488_v15 = vsel %vm378_vm1, 1e+10, %v472_v1  ;;  %v3992_v47 = vand.u32 4294901760, %v3287_v8  ;;  %v3998_v60 = vand.u32 4294901760, %v3325_v24 }
  0xe1   : > { %v647_v16 = vsub.f32 %v3275_v0, %v3993_v6  ;;  %v3315_v18 = vmul.f32 %v488_v15, %v372_v10  ;;  %v458_v10 = vsel %vm443_vm0, %v424_v51, %v2965_v61  ;;  %v3991_v15 = vand.u32 4294901760, %v3334_v32 }
  0xe2   : > { %v510_v26 = vsel %vm378_vm1, 0.0, %v3280_v59  ;;  %v655_v30 = vsub.f32 %v3287_v8, %v3992_v47 }
  0xe3   : > { %v3301_v45 = vand.u32 4294901760, %v510_v26  ;;  %v422_v40 = vpop.permute.xlu0 %421  ;;  %v648_v11 = vand.u32 4294901760, %v647_v16 }
  0xe4   : > { %v404_v46 = vpop.permute.xlu1 %403  ;;  %v457_v34 = vsel %vm443_vm0, %v422_v40, %v2947_v54  ;;  %v365_v40 = vld [vmem:[%s2814_s0 + $0x28] sm:$0xff] }
  0xe5   : > { %v448_v3 = vsel %vm443_vm0, %v404_v46, %v2950_v55  ;;  %838 = vmatmul.f32.gmra.mxu3 %v3263_v33  ;;  %v3319_v23 = vsub.f32 %v510_v26, %v3301_v45  ;;  %649 = vmatmul.f32.gmra.mxu2 %v648_v11  ;;  %v473_v2 = vsub.f32 %v457_v34, %v2947_v54  ;;  %v520_v54 = vsel %vm378_vm1, 0.0, %v3315_v18 }
  0xe6   : > { %585 = vmatmul.f32.gmra.mxu0 %v584_v63  ;;  %806 = vmatmul.f32.gmra.mxu1 %v3301_v45  ;;  %v464_v22 = vsub.f32 %v448_v3, %v2950_v55  ;;  %v656_v63 = vand.u32 4294901760, %v655_v30  ;;  %v3361_v34 = vand.u32 4294901760, %v520_v54  ;;  %v466_v3 = vsub.f32 %v450_v37, %v3003_v41 }
  0xe7   : > { %v590_v55 = vand.u32 4294901760, %v3319_v23  ;;  %v489_v50 = vsel %vm378_vm1, 1e+10, %v473_v2  ;;  %v663_v2 = vsub.f32 %v3334_v32, %v3991_v15 }
  0xe8   : > { %v480_v19 = vsel %vm378_vm1, 1e+10, %v464_v22  ;;  %v3364_v11 = vmul.f32 %v489_v50, %v373_v44  ;;  %v482_v20 = vsel %vm378_vm1, 1e+10, %v466_v3  ;;  %v3385_v30 = vsub.f32 %v520_v54, %v3361_v34  ;;  %v374_v44 = vld [vmem:[%s2814_s0 + $0x70] sm:$0xff] }
  0xe9   : > { %v3327_v29 = vmul.f32 %v480_v19, %v364_v9  ;;  %v591_v25 = vsub.f32 %v3319_v23, %v590_v55  ;;  %v474_v9 = vsub.f32 %v458_v10, %v2965_v61  ;;  %v366_v19 = vld [vmem:[%s2814_s0 + $0x30] sm:$0xff] }
  0xea   : > { %v521_v37 = vsel %vm378_vm1, 0.0, %v3364_v11 }
  0xeb   : > { %v512_v36 = vsel %vm378_vm1, 0.0, %v3327_v29  ;;  %v406_v1 = vpop.permute.xlu0 %405  ;;  %v592_v16 = vand.u32 4294901760, %v591_v25  ;;  %v490_v50 = vsel %vm378_vm1, 1e+10, %v474_v9  ;;  %v3407_v3 = vand.u32 4294901760, %v521_v37 }
  0xec   : > { %v3351_v62 = vand.u32 4294901760, %v512_v36  ;;  %v449_v26 = vsel %vm443_vm0, %v406_v1, %v2992_v35  ;;  %v426_v61 = vpop.permute.xlu1 %425  ;;  %v3410_v9 = vmul.f32 %v490_v50, %v374_v44 }
  0xed   : > { %v465_v46 = vsub.f32 %v449_v26, %v2992_v35  ;;  %842 = vmatmul.f32.gmra.mxu3 %v3310_v5  ;;  %657 = vmatmul.f32.gmra.mxu2 %v656_v63  ;;  %v599_v35 = vsub.f32 %v3325_v24, %v3998_v60  ;;  %v3399_v26 = vmul.f32 %v482_v20, %v366_v19 }
  0xee   : > { %810 = vmatmul.f32.gmra.mxu1 %v3303_v39  ;;  %593 = vmatmul.f32.gmra.mxu0 %v592_v16  ;;  %v3374_v22 = vsub.f32 %v512_v36, %v3351_v62  ;;  %v459_v10 = vsel %vm443_vm0, %v426_v61, %v2995_v38  ;;  %v367_v61 = vld [vmem:[%s2814_s0 + $0x38] sm:$0xff]  ;;  %v3430_v50 = vsub.f32 %v521_v37, %v3407_v3 }
  0xef   : > { %v481_v51 = vsel %vm378_vm1, 1e+10, %v465_v46  ;;  %v600_v25 = vand.u32 4294901760, %v599_v35  ;;  %v3990_v46 = vand.u32 4294901760, %v3385_v30  ;;  %v514_v20 = vsel %vm378_vm1, 0.0, %v3399_v26 }
  0xf0   : > { %v3376_v41 = vmul.f32 %v481_v51, %v365_v40  ;;  %v3997_v1 = vand.u32 4294901760, %v3374_v22  ;;  %v664_v40 = vand.u32 4294901760, %v663_v2  ;;  %v475_v2 = vsub.f32 %v459_v10, %v2995_v38 }
  0xf1   : > { %v522_v38 = vsel %vm378_vm1, 0.0, %v3410_v9  ;;  %v3994_v37 = vand.u32 4294901760, %v3430_v50 }
  0xf2   : > { %v513_v36 = vsel %vm378_vm1, 0.0, %v3376_v41  ;;  %v607_v35 = vsub.f32 %v3374_v22, %v3997_v1 }
  0xf3   : > { %v3397_v63 = vand.u32 4294901760, %v513_v36  ;;  %v410_v54 = vpop.permute.xlu0 %409 }
  0xf4   : > { %v451_v16 = vsel %vm443_vm0, %v410_v54, %v3018_v48  ;;  %v491_v54 = vsel %vm378_vm1, 1e+10, %v475_v2  ;;  %vm1869_vm0 = vcmask 1048512  }
  0xf5   : > { %v467_v51 = vsub.f32 %v451_v16, %v3018_v48  ;;  %846 = vmatmul.f32.gmra.mxu3 %v3361_v34  ;;  %665 = vmatmul.f32.gmra.mxu2 %v664_v40  ;;  %v3418_v19 = vsub.f32 %v513_v36, %v3397_v63  ;;  %v671_v48 = vsub.f32 %v3385_v30, %v3990_v46  ;;  %v608_v36 = vand.u32 4294901760, %v607_v35 }
  0xf6   : > { %814 = vmatmul.f32.gmra.mxu1 %v3351_v62  ;;  %601 = vmatmul.f32.gmra.mxu0 %v600_v25  ;;  %v375_v25 = vld [vmem:[%s2814_s0 + $0x78] sm:$0xff]  ;;  %v3439_v16 = vand.u32 4294901760, %v514_v20 }
  0xf7   : > { %v483_v44 = vsel %vm378_vm1, 1e+10, %v467_v51  ;;  %v3996_v10 = vand.u32 4294901760, %v3418_v19  ;;  %v672_v46 = vand.u32 4294901760, %v671_v48  ;;  %v3445_v51 = vand.u32 4294901760, %v522_v38 }
  0xf8   : > { %v3441_v40 = vmul.f32 %v483_v44, %v367_v61  ;;  %v3448_v35 = vmul.f32 %v491_v54, %v375_v25  ;;  %v621_v61 = vsub.f32 %v514_v20, %v3439_v16  ;;  %v679_v44 = vsub.f32 %v3430_v50, %v3994_v37 }
  0xf9   : > { %v615_v2 = vsub.f32 %v3418_v19, %v3996_v10  ;;  %v3461_v15 = vsub.f32 %v522_v38, %v3445_v51 }
  0xfa   : > { %v515_v48 = vsel %vm378_vm1, 0.0, %v3441_v40  ;;  %v622_v25 = vand.u32 4294901760, %v621_v61  ;;  %v680_v47 = vand.u32 4294901760, %v679_v44 }
  0xfb   : > { %v628_v54 = vand.u32 4294901760, %v515_v48  ;;  %v3999_v20 = vand.u32 4294901760, %v3461_v15 }
  0xfc   : > { %v623_v38 = vsub.f32 %v621_v61, %v622_v25 }
  0xfd   : > { %850 = vmatmul.f32.gmra.mxu3 %v3407_v3  ;;  %673 = vmatmul.f32.gmra.mxu2 %v672_v46  ;;  %v523_v46 = vsel %vm378_vm1, 0.0, %v3448_v35  ;;  %v629_v37 = vsub.f32 %v515_v48, %v628_v54  ;;  %v687_v7 = vsub.f32 %v3461_v15, %v3999_v20  ;;  %vm1933_vm1 = vcmask 1041409  }
  0xfe   : > { %818 = vmatmul.f32.gmra.mxu1 %v3397_v63  ;;  %609 = vmatmul.f32.gmra.mxu0 %v608_v36  ;;  %v616_v36 = vand.u32 4294901760, %v615_v2  ;;  %v3468_v6 = vand.u32 4294901760, %v523_v46  ;;  %v624_v44 = vand.u32 4294901760, %v623_v38 }
  0xff   : > { %v630_v10 = vand.u32 4294901760, %v629_v37  ;;  %v688_v1 = vand.u32 4294901760, %v687_v7 }
 0x100   : > { %v3475_v2 = vsub.f32 %v523_v46, %v3468_v6 }
 0x102   : > { %v694_v60 = vand.u32 4294901760, %v3475_v2 }
 0x104   : > { %v695_v48 = vsub.f32 %v3475_v2, %v694_v60 }
 0x105   : > { %854 = vmatmul.f32.gmra.mxu3 %v3445_v51  ;;  %681 = vmatmul.f32.gmra.mxu2 %v680_v47  ;;  %v631_v47 = vsub.f32 %v629_v37, %v630_v10 }
 0x106   : > { %822 = vmatmul.f32.gmra.mxu1 %v3439_v16  ;;  %617 = vmatmul.f32.gmra.mxu0 %v616_v36  ;;  %v696_v20 = vand.u32 4294901760, %v695_v48  ;;  %v4025_v48 = vand.u32 4294901760, %v3430_v50 }
 0x107   : > { %v632_v36 = vand.u32 4294901760, %v631_v47 }
 0x10d   : > { %858 = vmatmul.f32.gmra.mxu3 %v3468_v6  ;;  %689 = vmatmul.f32.gmra.mxu2 %v688_v1  ;;  %v4022_v1 = vand.u32 4294901760, %v3287_v8 }
 0x10e   : > { %826 = vmatmul.f32.gmra.mxu1 %v628_v54  ;;  %625 = vmatmul.f32.gmra.mxu0 %v624_v44 }
 0x115   : > { %1026 = vmatmul.f32.vlgmr.msrb.gmra.mxu3 %v574_v14  ;;  %697 = vmatmul.f32.gmra.mxu2 %v696_v20  ;;  %v4017_v14 = vand.u32 4294901760, %v3325_v24 }
 0x116   : > { %1282 = vmatmul.f32.vlgmr.msrb.gmra.mxu1 %v3196_v21  ;;  %633 = vmatmul.f32.gmra.mxu0 %v632_v36 }
 0x11d   : > { %1032 = vmatmul.f32.gmra.mxu3 %v582_v13  ;;  %912 = vmatmul.f32.vlgmr.msrb.gmra.mxu2 %v3219_v49  ;;  %v4020_v49 = vand.u32 4294901760, %v3223_v57 }
 0x11e   : > { %1286 = vmatmul.f32.gmra.mxu1 %v3183_v58  ;;  %1185 = vmatmul.f32.vlgmr.msrb.gmra.mxu0 %v3196_v21  ;;  %v4018_v21 = vand.u32 4294901760, %v3374_v22 }
 0x125   : > { %1038 = vmatmul.f32.gmra.mxu3 %v590_v55  ;;  %917 = vmatmul.f32.gmra.mxu2 %v3209_v42 }
 0x126   : > { %1290 = vmatmul.f32.gmra.mxu1 %v3301_v45  ;;  %1189 = vmatmul.f32.gmra.mxu0 %v3183_v58  ;;  %v4019_v58 = vand.u32 4294901760, %v3418_v19 }
 0x12d   : > { %1044 = vmatmul.f32.gmra.mxu3 %v4017_v14  ;;  %922 = vmatmul.f32.gmra.mxu2 %v3319_v23 }
 0x12e   : > { %1294 = vmatmul.f32.gmra.mxu1 %v3303_v39  ;;  %1193 = vmatmul.f32.gmra.mxu0 %v3301_v45 }
 0x135   : > { %1050 = vmatmul.f32.gmra.mxu3 %v4018_v21  ;;  %927 = vmatmul.f32.gmra.mxu2 %v3325_v24 }
 0x136   : > { %1298 = vmatmul.f32.gmra.mxu1 %v3351_v62  ;;  %1197 = vmatmul.f32.gmra.mxu0 %v3303_v39  ;;  %v4021_v39 = vand.u32 4294901760, %v3275_v0 }
 0x13d   : > { %1056 = vmatmul.f32.gmra.mxu3 %v4019_v58  ;;  %932 = vmatmul.f32.gmra.mxu2 %v3374_v22 }
 0x13e   : > { %1302 = vmatmul.f32.gmra.mxu1 %v3397_v63  ;;  %1201 = vmatmul.f32.gmra.mxu0 %v3351_v62 }
 0x145   : > { %1062 = vmatmul.f32.gmra.mxu3 %v622_v25  ;;  %937 = vmatmul.f32.gmra.mxu2 %v3418_v19 }
 0x146   : > { %1306 = vmatmul.f32.gmra.mxu1 %v3439_v16  ;;  %1205 = vmatmul.f32.gmra.mxu0 %v3397_v63 }
 0x14d   : > { %1068 = vmatmul.f32.gmra.mxu3 %v630_v10  ;;  %942 = vmatmul.f32.gmra.mxu2 %v621_v61 }
 0x14e   : > { %1310 = vmatmul.f32.gmra.mxu1 %v628_v54  ;;  %1209 = vmatmul.f32.gmra.mxu0 %v3439_v16  ;;  %v4023_v16 = vand.u32 4294901760, %v3334_v32 }
 0x153   : > { %v3514_v42 = vpop.f32.mrf.mxu1 }
 0x155   : > { %1074 = vmatmul.f32.gmra.mxu3 %v4020_v49  ;;  %947 = vmatmul.f32.gmra.mxu2 %v629_v37  ;;  %v4026_v49 = vand.u32 4294901760, %v3461_v15 }
 0x156   : > { %1314 = vmatmul.f32.gmra.mxu1 %v3198_v56  ;;  %1213 = vmatmul.f32.gmra.mxu0 %v628_v54  ;;  %v4024_v54 = vand.u32 4294901760, %v3385_v30 }
 0x158   : > { %v831_v7 = vpop.f32.mrf.mxu3 }
 0x15b   : > { %v3519_v13 = vpop.f32.mrf.mxu0  ;;  %v3521_v45 = vpop.f32.mrf.mxu1 }
 0x15d   : > { %1080 = vmatmul.f32.gmra.mxu3 %v4021_v39  ;;  %952 = vmatmul.f32.gmra.mxu2 %v3223_v57 }
 0x15e   : > { %1318 = vmatmul.f32.gmra.mxu1 %v3255_v28  ;;  %1217 = vmatmul.f32.gmra.mxu0 %v3198_v56 }
 0x160   : > { %v835_v23 = vpop.f32.mrf.mxu3  ;;  %v642_v24 = vpop.f32.mrf.mxu2 }
 0x161   : > { %v3530_v62 = vadd.f32 %v831_v7, %v642_v24 }
 0x163   : > { %v3528_v55 = vpop.f32.mrf.mxu0  ;;  %v3532_v22 = vpop.f32.mrf.mxu1 }
 0x165   : > { %1086 = vmatmul.f32.gmra.mxu3 %v4022_v1  ;;  %957 = vmatmul.f32.gmra.mxu2 %v3275_v0 }
 0x166   : > { %1322 = vmatmul.f32.gmra.mxu1 %v3263_v33  ;;  %1221 = vmatmul.f32.gmra.mxu0 %v3255_v28 }
 0x168   : > { %v839_v57 = vpop.f32.mrf.mxu3  ;;  %v650_v63 = vpop.f32.mrf.mxu2 }
 0x169   : > { %v3539_v56 = vadd.f32 %v835_v23, %v650_v63 }
 0x16b   : > { %v811_v19 = vpop.f32.mrf.mxu1  ;;  %v3541_v10 = vpop.f32.mrf.mxu0 }
 0x16d   : > { %1092 = vmatmul.f32.gmra.mxu3 %v4023_v16  ;;  %962 = vmatmul.f32.gmra.mxu2 %v3287_v8 }
 0x16e   : > { %1326 = vmatmul.f32.gmra.mxu1 %v3310_v5  ;;  %1225 = vmatmul.f32.gmra.mxu0 %v3263_v33 }
 0x170   : > { %v843_v37 = vpop.f32.mrf.mxu3  ;;  %v658_v0 = vpop.f32.mrf.mxu2 }
 0x171   : > { %v3548_v61 = vadd.f32 %v839_v57, %v658_v0 }
 0x173   : > { %v815_v28 = vpop.f32.mrf.mxu1  ;;  %v602_v46 = vpop.f32.mrf.mxu0 }
 0x174   : > { %v3550_v25 = vadd.f32 %v811_v19, %v602_v46 }
 0x175   : > { %1098 = vmatmul.f32.gmra.mxu3 %v4024_v54  ;;  %967 = vmatmul.f32.gmra.mxu2 %v3334_v32  ;;  %v1394_v54 = vsub.f32 0.0, %v3181_v53 }
 0x176   : > { %1330 = vmatmul.f32.gmra.mxu1 %v3361_v34  ;;  %1229 = vmatmul.f32.gmra.mxu0 %v3310_v5 }
 0x178   : > { %v847_v8 = vpop.f32.mrf.mxu3  ;;  %v666_v20 = vpop.f32.mrf.mxu2 }
 0x179   : > { %v3557_v33 = vadd.f32 %v843_v37, %v666_v20 }
 0x17b   : > { %v819_v38 = vpop.f32.mrf.mxu1  ;;  %v610_v44 = vpop.f32.mrf.mxu0 }
 0x17c   : > { %v3559_v47 = vadd.f32 %v815_v28, %v610_v44 }
 0x17d   : > { %1104 = vmatmul.f32.gmra.mxu3 %v4025_v48  ;;  %972 = vmatmul.f32.gmra.mxu2 %v3385_v30 }
 0x17e   : > { %1334 = vmatmul.f32.gmra.mxu1 %v3407_v3  ;;  %1233 = vmatmul.f32.gmra.mxu0 %v3361_v34 }
 0x180   : > { %v851_v32 = vpop.f32.mrf.mxu3  ;;  %v674_v36 = vpop.f32.mrf.mxu2 }
 0x181   : > { %v3566_v5 = vadd.f32 %v847_v8, %v674_v36 }
 0x183   : > { %v823_v14 = vpop.f32.mrf.mxu1  ;;  %v618_v21 = vpop.f32.mrf.mxu0 }
 0x184   : > { %v3568_v58 = vadd.f32 %v819_v38, %v618_v21 }
 0x185   : > { %1110 = vmatmul.f32.gmra.mxu3 %v4026_v49  ;;  %977 = vmatmul.f32.gmra.mxu2 %v3430_v50 }
 0x186   : > { %1338 = vmatmul.f32.gmra.mxu1 %v3445_v51  ;;  %1237 = vmatmul.f32.gmra.mxu0 %v3407_v3 }
 0x188   : > { %v855_v30 = vpop.f32.mrf.mxu3  ;;  %v682_v7 = vpop.f32.mrf.mxu2 }
 0x189   : > { %v3575_v34 = vadd.f32 %v851_v32, %v682_v7 }
 0x18b   : > { %v827_v39 = vpop.f32.mrf.mxu1  ;;  %v626_v23 = vpop.f32.mrf.mxu0 }
 0x18c   : > { %v3577_v24 = vadd.f32 %v823_v14, %v626_v23 }
 0x18d   : > { %1116 = vmatmul.f32.gmra.mxu3 %v694_v60  ;;  %982 = vmatmul.f32.gmra.mxu2 %v3461_v15 }
 0x18e   : > { %1342 = vmatmul.f32.gmra.mxu1 %v3468_v6  ;;  %1241 = vmatmul.f32.gmra.mxu0 %v3445_v51  ;;  %v800_v51 = vadd.f32 %v3514_v42, %v3519_v13  ;;  %v1395_v42 = vsub.f32 0.0, %v3144_v27  ;;  %v1396_v27 = vsub.f32 0.0, %v3280_v59 }
 0x190   : > { %v859_v50 = vpop.f32.mrf.mxu3  ;;  %v690_v1 = vpop.f32.mrf.mxu2 }
 0x191   : > { %v3584_v3 = vadd.f32 %v855_v30, %v690_v1 }
 0x193   : > { %v1283_v57 = vpop.f32.mrf.mxu1  ;;  %v634_v63 = vpop.f32.mrf.mxu0 }
 0x194   : > { %v3586_v19 = vadd.f32 %v827_v39, %v634_v63  ;;  %v1412_v39 = vmul.f32 1.442695, %v1395_v42  ;;  %v2157_v63 = vld [vmem:[%s2817_s24] sm:$0xff]  }
 0x195   : > { %987 = vmatmul.f32.gmra.mxu2 %v3475_v2  ;;  %v1410_v2 = vmul.f32 1.442695, %v1394_v54 }
 0x196   : > { %1245 = vmatmul.f32.gmra.mxu0 %v3468_v6  ;;  %v804_v6 = vadd.f32 %v3521_v45, %v3528_v55  ;;  %v808_v45 = vadd.f32 %v3532_v22, %v3541_v10 }
 0x197   : > { %2384 = vpow2.f32 %v1410_v2 }
 0x198   : > { %v1027_v16 = vpop.f32.mrf.mxu3  ;;  %v698_v37 = vpop.f32.mrf.mxu2 }
 0x199   : > { %v3590_v0 = vadd.f32 %v859_v50, %v698_v37 }
 0x19b   : > { %v1287_v60 = vpop.f32.mrf.mxu1  ;;  %v1186_v15 = vpop.f32.mrf.mxu0 }
 0x19d   : > { %v2385_v50 = vpop.eup %2384 }
 0x1a0   : > { %v1033_v28 = vpop.f32.mrf.mxu3  ;;  %v913_v46 = vpop.f32.mrf.mxu2 }
 0x1a1   : > { %v914_v8 = vadd.f32 %v913_v46, %v800_v51 }
 0x1a3   : > { %v1291_v20 = vpop.f32.mrf.mxu1  ;;  %v1190_v38 = vpop.f32.mrf.mxu0  ;;  %v1028_v44 = vadd.f32 %v1027_v16, %v914_v8  ;;  %v2158_v8 = vunpack.c.l.bf16 %v2157_v63 }
 0x1a5   : > { %v1187_v48 = vadd.f32 %v1186_v15, %v1028_v44 }
 0x1a7   : > { %v1284_v32 = vadd.f32 %v1283_v57, %v1187_v48  ;;  %v2267_v57 = vld [vmem:[%s2817_s24 + $0x80] sm:$0xff]  }
 0x1a8   : > { %v1039_v36 = vpop.f32.mrf.mxu3  ;;  %v918_v14 = vpop.f32.mrf.mxu2  ;;  %v2222_v54 = vunpack.c.l.bf16 %v2267_v57  ;;  %v2448_v48 = vld [vmem:[%s2807_s30] sm:$0xff] }
 0x1a9   : > { %v1346_v13 = vsub.f32 0.0, %v1284_v32  ;;  %v919_v21 = vadd.f32 %v918_v14, %v804_v6 }
 0x1ab   : > { %v1295_v53 = vpop.f32.mrf.mxu1  ;;  %v1194_v49 = vpop.f32.mrf.mxu0  ;;  %v1362_v30 = vmul.f32 1.442695, %v1346_v13  ;;  %v1034_v7 = vadd.f32 %v1033_v28, %v919_v21  ;;  %v1442_v28 = vsub.f32 1.0, %v2385_v50 }
 0x1ad   : > { %2386 = vpow2.f32 %v1362_v30  ;;  %v1191_v23 = vadd.f32 %v1190_v38, %v1034_v7  ;;  %v2259_v30 = vld [vmem:[%s2817_s24 + $0x40] sm:$0xff]   ;;  %v1397_v7 = vsub.f32 0.0, %v3259_v31 }
 0x1ae   : > { %2388 = vpow2.f32 %v1412_v39 }
 0x1af   : > { %v1288_v55 = vadd.f32 %v1287_v60, %v1191_v23  ;;  %v1414_v60 = vmul.f32 1.442695, %v1396_v27 }
 0x1b0   : > { %v1045_v1 = vpop.f32.mrf.mxu3  ;;  %v923_v16 = vpop.f32.mrf.mxu2 }
 0x1b1   : > { %v1347_v37 = vsub.f32 0.0, %v1288_v55  ;;  %v924_v15 = vadd.f32 %v923_v16, %v808_v45  ;;  %v2223_v45 = vunpack.c.h.bf16 %v2267_v57  ;;  %v2159_v55 = vunpack.c.h.bf16 %v2157_v63 }
 0x1b2   : > { %v1398_v57 = vsub.f32 0.0, %v3327_v29 }
 0x1b3   : > { %v3603_v51 = vpop.f32.mrf.mxu1  ;;  %v1198_v46 = vpop.f32.mrf.mxu0  ;;  %v1364_v44 = vmul.f32 1.442695, %v1347_v37  ;;  %v1040_v22 = vadd.f32 %v1039_v36, %v924_v15  ;;  %v2190_v37 = vunpack.c.l.bf16 %v2259_v30 }
 0x1b4   : > { %v2387_v38 = vpop.eup %2386 }
 0x1b5   : > { %v1458_v10 = vmul.f32 %v2387_v38, %v1442_v28  ;;  %2390 = vpow2.f32 %v1364_v44  ;;  %v1195_v2 = vadd.f32 %v1194_v49, %v1040_v22  ;;  %v2389_v14 = vpop.eup %2388  ;;  %v1416_v28 = vmul.f32 1.442695, %v1397_v7 }
 0x1b6   : > { %2392 = vpow2.f32 %v1414_v60  ;;  %v1443_v23 = vsub.f32 1.0, %v2389_v14  ;;  %v3612_v60 = vld [vmem:[%s2817_s24 + $0x8] sm:$0xff]  }
 0x1b7   : > { %v1714_v6 = vmul.f32 %v2448_v48, %v1458_v10  ;;  %v1602_v32 = vmul.f32 %v2222_v54, %v1458_v10  ;;  %v1570_v59 = vmul.f32 %v2158_v8, %v1458_v10  ;;  %v1292_v42 = vadd.f32 %v1291_v20, %v1195_v2 }
 0x1b8   : > { %v1051_v13 = vpop.f32.mrf.mxu3  ;;  %v928_v21 = vpop.f32.mrf.mxu2  ;;  %v1586_v22 = vmul.f32 %v2190_v37, %v1458_v10 }
 0x1b9   : > { %1730 = vadd.xlane.f32.xlu0 %v1714_v6  ;;  %1682 = vadd.xlane.f32.xlu2 %v1602_v32  ;;  %v1348_v39 = vsub.f32 0.0, %v1292_v42  ;;  %v929_v36 = vadd.f32 %v928_v21, %v3550_v25  ;;  %v2162_v6 = vunpack.c.l.bf16 %v3612_v60  ;;  %v1418_v21 = vmul.f32 1.442695, %v1398_v57 }
 0x1ba   : > { %1618 = vadd.xlane.f32.xlu1 %v1570_v59 }
 0x1bb   : > { %v1202_v49 = vpop.f32.mrf.mxu0  ;;  %v3609_v50 = vpop.f32.mrf.mxu1  ;;  %v1366_v16 = vmul.f32 1.442695, %v1348_v39  ;;  %v1046_v27 = vadd.f32 %v1045_v1, %v929_v36 }
 0x1bc   : > { %v2391_v20 = vpop.eup %2390 }
 0x1bd   : > { %v1459_v15 = vmul.f32 %v2391_v20, %v1443_v23  ;;  %2394 = vpow2.f32 %v1366_v16  ;;  %v1199_v54 = vadd.f32 %v1198_v46, %v1046_v27  ;;  %v2393_v38 = vpop.eup %2392  ;;  %v1399_v16 = vsub.f32 0.0, %v3376_v41  ;;  %v2450_v41 = vld [vmem:[%s2807_s30 + $0x10] sm:$0xff] }
 0x1be   : > { %2396 = vpow2.f32 %v1416_v28  ;;  %v1444_v48 = vsub.f32 1.0, %v2393_v38 }
 0x1bf   : > { %v1603_v31 = vmul.f32 %v2223_v45, %v1459_v15  ;;  %v1571_v8 = vmul.f32 %v2159_v55, %v1459_v15  ;;  %v1296_v25 = vadd.f32 %v1295_v53, %v1199_v54  ;;  %v2191_v53 = vunpack.c.h.bf16 %v2259_v30  ;;  %v2449_v45 = vld [vmem:[%s2807_s30 + $0x8] sm:$0xff] }
 0x1c0   : > { %v1057_v44 = vpop.f32.mrf.mxu3  ;;  %v933_v2 = vpop.f32.mrf.mxu2  ;;  %v1715_v55 = vmul.f32 %v2449_v45, %v1459_v15  ;;  %v2260_v30 = vld [vmem:[%s2817_s24 + $0x48] sm:$0xff]  }
 0x1c1   : > { %1684 = vadd.xlane.f32.xlu0 %v1603_v31  ;;  %1620 = vadd.xlane.f32.xlu2 %v1571_v8  ;;  %v1349_v1 = vsub.f32 0.0, %v1296_v25  ;;  %v934_v63 = vadd.f32 %v933_v2, %v3559_v47  ;;  %v1587_v47 = vmul.f32 %v2191_v53, %v1459_v15  ;;  %v1420_v25 = vmul.f32 1.442695, %v1399_v16 }
 0x1c2   : > { %1650 = vadd.xlane.f32.xlu1 %v1586_v22 }
 0x1c3   : > { %v1206_v46 = vpop.f32.mrf.mxu0  ;;  %v2395_v10 = vpop.eup %2394  ;;  %v1368_v32 = vmul.f32 1.442695, %v1349_v1  ;;  %v1052_v59 = vadd.f32 %v1051_v13, %v934_v63  ;;  %v3623_v13 = vld [vmem:[%s2817_s24 + $0x88] sm:$0xff]  }
 0x1c4   : > { %v3617_v14 = vpop.f32.mrf.mxu1  ;;  %v1460_v42 = vmul.f32 %v2395_v10, %v1444_v48  ;;  %v2397_v39 = vpop.eup %2396  ;;  %v2226_v8 = vunpack.c.l.bf16 %v3623_v13 }
 0x1c5   : > { %2398 = vpow2.f32 %v1368_v32  ;;  %v1203_v29 = vadd.f32 %v1202_v49, %v1052_v59  ;;  %v1445_v37 = vsub.f32 1.0, %v2397_v39 }
 0x1c6   : > { %v1572_v7 = vmul.f32 %v2162_v6, %v1460_v42  ;;  %2400 = vpow2.f32 %v1418_v21  ;;  %v1716_v1 = vmul.f32 %v2450_v41, %v1460_v42  ;;  %v1604_v6 = vmul.f32 %v2226_v8, %v1460_v42 }
 0x1c7   : > { %v1300_v36 = vadd.f32 %v3603_v51, %v1203_v29  ;;  %v2194_v51 = vunpack.c.l.bf16 %v2260_v30  ;;  %v2163_v21 = vunpack.c.h.bf16 %v3612_v60  ;;  %v3638_v60 = vld [vmem:[%s2817_s24 + $0x90] sm:$0xff]  }
 0x1c8   : > { %v1063_v23 = vpop.f32.mrf.mxu3  ;;  %v938_v20 = vpop.f32.mrf.mxu2 }
 0x1c9   : > { %1622 = vadd.xlane.f32.xlu0 %v1572_v7  ;;  %1652 = vadd.xlane.f32.xlu2 %v1587_v47  ;;  %v1350_v27 = vsub.f32 0.0, %v1300_v36  ;;  %v939_v49 = vadd.f32 %v938_v20, %v3568_v58  ;;  %v1588_v57 = vmul.f32 %v2194_v51, %v1460_v42  ;;  %v2195_v42 = vunpack.c.h.bf16 %v2260_v30 }
 0x1ca   : > { %1732 = vadd.xlane.f32.xlu1 %v1715_v55  ;;  %v1401_v30 = vsub.f32 0.0, %v3441_v40 }
 0x1cb   : > { %v1210_v28 = vpop.f32.mrf.mxu0  ;;  %v2399_v54 = vpop.eup %2398  ;;  %v1370_v31 = vmul.f32 1.442695, %v1350_v27  ;;  %v1058_v15 = vadd.f32 %v1057_v44, %v939_v49  ;;  %v1400_v44 = vsub.f32 0.0, %v3399_v26  ;;  %v2451_v26 = vld [vmem:[%s2807_s30 + $0x18] sm:$0xff] }
 0x1cc   : > { %v1461_v38 = vmul.f32 %v2399_v54, %v1445_v37  ;;  %v1311_v2 = vpop.f32.mrf.mxu1  ;;  %v2401_v63 = vpop.eup %2400 }
 0x1cd   : > { %2402 = vpow2.f32 %v1370_v31  ;;  %v1207_v22 = vadd.f32 %v1206_v46, %v1058_v15  ;;  %v1446_v46 = vsub.f32 1.0, %v2401_v63  ;;  %v1422_v39 = vmul.f32 1.442695, %v1400_v44 }
 0x1ce   : > { %2404 = vpow2.f32 %v1420_v25  ;;  %v1717_v45 = vmul.f32 %v2451_v26, %v1461_v38  ;;  %v1573_v55 = vmul.f32 %v2163_v21, %v1461_v38  ;;  %v1589_v27 = vmul.f32 %v2195_v42, %v1461_v38 }
 0x1cf   : > { %v1304_v58 = vadd.f32 %v3609_v50, %v1207_v22  ;;  %v2227_v15 = vunpack.c.h.bf16 %v3623_v13 }
 0x1d0   : > { %v1069_v48 = vpop.f32.mrf.mxu3  ;;  %v943_v53 = vpop.f32.mrf.mxu2 }
 0x1d1   : > { %1654 = vadd.xlane.f32.xlu0 %v1588_v57  ;;  %1734 = vadd.xlane.f32.xlu2 %v1716_v1  ;;  %v1351_v10 = vsub.f32 0.0, %v1304_v58  ;;  %v944_v32 = vadd.f32 %v943_v53, %v3577_v24  ;;  %v1424_v1 = vmul.f32 1.442695, %v1401_v30  ;;  %v1605_v63 = vmul.f32 %v2227_v15, %v1461_v38 }
 0x1d2   : > { %1686 = vadd.xlane.f32.xlu1 %v1604_v6 }
 0x1d3   : > { %v1214_v59 = vpop.f32.mrf.mxu0  ;;  %v2403_v29 = vpop.eup %2402  ;;  %v1372_v50 = vmul.f32 1.442695, %v1351_v10  ;;  %v1064_v7 = vadd.f32 %v1063_v23, %v944_v32  ;;  %v3641_v23 = vld [vmem:[%s2817_s24 + $0x10] sm:$0xff]  }
 0x1d4   : > { %v3633_v47 = vmul.f32 %v2403_v29, %v1446_v46  ;;  %v2405_v24 = vpop.eup %2404  ;;  %v1315_v49 = vpop.f32.mrf.mxu1  ;;  %v2166_v57 = vunpack.c.l.bf16 %v3641_v23  ;;  %v2261_v10 = vld [vmem:[%s2817_s24 + $0x50] sm:$0xff]  }
 0x1d5   : > { %2406 = vpow2.f32 %v1372_v50  ;;  %v1211_v36 = vadd.f32 %v1210_v28, %v1064_v7  ;;  %v1447_v54 = vsub.f32 1.0, %v2405_v24  ;;  %v2198_v29 = vunpack.c.l.bf16 %v2261_v10  ;;  %v2452_v24 = vld [vmem:[%s2807_s30 + $0x20] sm:$0xff] }
 0x1d6   : > { %2408 = vpow2.f32 %v1422_v39  ;;  %v1574_v44 = vmul.f32 %v2166_v57, %v3633_v47 }
 0x1d7   : > { %v1308_v20 = vadd.f32 %v3617_v14, %v1211_v36  ;;  %v2230_v14 = vunpack.c.l.bf16 %v3638_v60 }
 0x1d8   : > { %v1075_v16 = vpop.f32.mrf.mxu3  ;;  %v948_v37 = vpop.f32.mrf.mxu2 }
 0x1d9   : > { %1736 = vadd.xlane.f32.xlu0 %v1717_v45  ;;  %1624 = vadd.xlane.f32.xlu2 %v1573_v55  ;;  %v1352_v28 = vsub.f32 0.0, %v1308_v20  ;;  %v949_v51 = vadd.f32 %v948_v37, %v3586_v19  ;;  %v1606_v19 = vmul.f32 %v2230_v14, %v3633_v47  ;;  %v1718_v20 = vmul.f32 %v2452_v24, %v3633_v47 }
 0x1da   : > { %1656 = vadd.xlane.f32.xlu1 %v1589_v27  ;;  %v3662_v27 = vld [vmem:[%s2817_s24 + $0x18] sm:$0xff]   ;;  %v2167_v14 = vunpack.c.h.bf16 %v3641_v23 }
 0x1db   : > { %v1218_v31 = vpop.f32.mrf.mxu0  ;;  %v2407_v8 = vpop.eup %2406  ;;  %v1374_v25 = vmul.f32 1.442695, %v1352_v28  ;;  %v1070_v22 = vadd.f32 %v1069_v48, %v949_v51  ;;  %v1402_v48 = vsub.f32 0.0, %v3179_v52 }
 0x1dc   : > { %v3648_v41 = vmul.f32 %v2407_v8, %v1447_v54  ;;  %v2409_v58 = vpop.eup %2408  ;;  %v1319_v21 = vpop.f32.mrf.mxu1 }
 0x1dd   : > { %2410 = vpow2.f32 %v1374_v25  ;;  %v1215_v40 = vadd.f32 %v1214_v59, %v1070_v22  ;;  %v1448_v59 = vsub.f32 1.0, %v2409_v58  ;;  %v1426_v36 = vmul.f32 1.442695, %v1402_v48 }
 0x1de   : > { %2412 = vpow2.f32 %v1424_v1  ;;  %v2231_v25 = vunpack.c.h.bf16 %v3638_v60  ;;  %v1404_v60 = vsub.f32 0.0, %v3233_v17 }
 0x1df   : > { %v1312_v6 = vadd.f32 %v1311_v2, %v1215_v40  ;;  %v2199_v2 = vunpack.c.h.bf16 %v2261_v10  ;;  %v1575_v40 = vmul.f32 %v2167_v14, %v3648_v41 }
 0x1e0   : > { %v1081_v53 = vpop.f32.mrf.mxu3  ;;  %v953_v13 = vpop.f32.mrf.mxu2  ;;  %v1607_v23 = vmul.f32 %v2231_v25, %v3648_v41 }
 0x1e1   : > { %1690 = vadd.xlane.f32.xlu0 %v1606_v19  ;;  %1688 = vadd.xlane.f32.xlu2 %v1605_v63  ;;  %v1353_v32 = vsub.f32 0.0, %v1312_v6  ;;  %v954_v46 = vadd.f32 %v953_v13, %v3530_v62  ;;  %v1591_v26 = vmul.f32 %v2199_v2, %v3648_v41  ;;  %v1590_v62 = vmul.f32 %v2198_v29, %v3633_v47  ;;  %v3675_v6 = vld [vmem:[%s2817_s24 + $0x58] sm:$0xff]  }
 0x1e2   : > { %1626 = vadd.xlane.f32.xlu1 %v1574_v44  ;;  %v1430_v2 = vmul.f32 1.442695, %v1404_v60 }
 0x1e3   : > { %v1222_v38 = vpop.f32.mrf.mxu0  ;;  %v2411_v50 = vpop.eup %2410  ;;  %v1376_v7 = vmul.f32 1.442695, %v1353_v32  ;;  %v1076_v42 = vadd.f32 %v1075_v16, %v954_v46  ;;  %v1403_v16 = vsub.f32 0.0, %v3231_v4 }
 0x1e4   : > { %v3655_v39 = vmul.f32 %v2411_v50, %v1448_v59  ;;  %v2413_v45 = vpop.eup %2412  ;;  %v1323_v22 = vpop.f32.mrf.mxu1  ;;  %v2202_v59 = vunpack.c.l.bf16 %v3675_v6  ;;  %v2453_v50 = vld [vmem:[%s2807_s30 + $0x30] sm:$0xff] }
 0x1e5   : > { %2414 = vpow2.f32 %v1376_v7  ;;  %v1219_v52 = vadd.f32 %v1218_v31, %v1076_v42  ;;  %v1449_v54 = vsub.f32 1.0, %v2413_v45  ;;  %v1428_v4 = vmul.f32 1.442695, %v1403_v16  ;;  %v2454_v7 = vld [vmem:[%s2807_s30 + $0x28] sm:$0xff] }
 0x1e6   : > { %2416 = vpow2.f32 %v1426_v36  ;;  %v1719_v42 = vmul.f32 %v2454_v7, %v3648_v41 }
 0x1e7   : > { %v1316_v55 = vadd.f32 %v1315_v49, %v1219_v52  ;;  %v2170_v49 = vunpack.c.l.bf16 %v3662_v27 }
 0x1e8   : > { %v958_v37 = vpop.f32.mrf.mxu2  ;;  %v1087_v30 = vpop.f32.mrf.mxu3 }
 0x1e9   : > { %1660 = vadd.xlane.f32.xlu0 %v1591_v26  ;;  %1658 = vadd.xlane.f32.xlu2 %v1590_v62  ;;  %v1354_v28 = vsub.f32 0.0, %v1316_v55  ;;  %v959_v51 = vadd.f32 %v958_v37, %v3539_v56  ;;  %v1576_v56 = vmul.f32 %v2170_v49, %v3655_v39  ;;  %v1592_v26 = vmul.f32 %v2202_v59, %v3655_v39  ;;  %v2270_v62 = vld [vmem:[%s2817_s24 + $0x98] sm:$0xff]  }
 0x1ea   : > { %1738 = vadd.xlane.f32.xlu1 %v1718_v20  ;;  %v1405_v55 = vsub.f32 0.0, %v3267_v43  ;;  %v2234_v16 = vunpack.c.l.bf16 %v2270_v62  ;;  %v2455_v59 = vld [vmem:[%s2807_s30 + $0x38] sm:$0xff] }
 0x1eb   : > { %v1226_v31 = vpop.f32.mrf.mxu0  ;;  %v2415_v47 = vpop.eup %2414  ;;  %v1378_v15 = vmul.f32 1.442695, %v1354_v28  ;;  %v1082_v8 = vadd.f32 %v1081_v53, %v959_v51 }
 0x1ec   : > { %v3669_v57 = vmul.f32 %v2415_v47, %v1449_v54  ;;  %v2417_v19 = vpop.eup %2416  ;;  %v1327_v29 = vpop.f32.mrf.mxu1  ;;  %v2171_v54 = vunpack.c.h.bf16 %v3662_v27  ;;  %v1432_v14 = vmul.f32 1.442695, %v1405_v55  ;;  %v1406_v27 = vsub.f32 0.0, %v3315_v18 }
 0x1ed   : > { %2418 = vpow2.f32 %v1378_v15  ;;  %v1223_v1 = vadd.f32 %v1222_v38, %v1082_v8  ;;  %v1450_v10 = vsub.f32 1.0, %v2417_v19 }
 0x1ee   : > { %2420 = vpow2.f32 %v1428_v4  ;;  %v3697_v4 = vld [vmem:[%s2817_s24 + $0x60] sm:$0xff]  }
 0x1ef   : > { %v1320_v63 = vadd.f32 %v1319_v21, %v1223_v1 }
 0x1f0   : > { %v963_v58 = vpop.f32.mrf.mxu2  ;;  %v1093_v13 = vpop.f32.mrf.mxu3 }
 0x1f1   : > { %1630 = vadd.xlane.f32.xlu0 %v1576_v56  ;;  %1628 = vadd.xlane.f32.xlu2 %v1575_v40  ;;  %v1355_v53 = vsub.f32 0.0, %v1320_v63  ;;  %v964_v44 = vadd.f32 %v963_v58, %v3548_v61  ;;  %v1720_v61 = vmul.f32 %v2453_v50, %v3655_v39  ;;  %v1407_v50 = vsub.f32 0.0, %v3364_v11 }
 0x1f2   : > { %1692 = vadd.xlane.f32.xlu1 %v1607_v23  ;;  %v2203_v23 = vunpack.c.h.bf16 %v3675_v6  ;;  %v2255_v6 = vld [vmem:[%s2817_s24 + $0x20] sm:$0xff]  }
 0x1f3   : > { %v2419_v48 = vpop.eup %2418  ;;  %v1380_v32 = vmul.f32 1.442695, %v1355_v53  ;;  %v1088_v46 = vadd.f32 %v1087_v30, %v964_v44  ;;  %v1230_v21 = vpop.f32.mrf.mxu0  ;;  %v2235_v30 = vunpack.c.h.bf16 %v2270_v62 }
 0x1f4   : > { %v3680_v38 = vmul.f32 %v2419_v48, %v1450_v10  ;;  %v2421_v36 = vpop.eup %2420  ;;  %v1331_v1 = vpop.f32.mrf.mxu1  ;;  %v1434_v10 = vmul.f32 1.442695, %v1406_v27  ;;  %v1593_v48 = vmul.f32 %v2203_v23, %v3669_v57  ;;  %v2456_v27 = vld [vmem:[%s2807_s30 + $0x48] sm:$0xff] }
 0x1f5   : > { %2422 = vpow2.f32 %v1380_v32  ;;  %v1227_v17 = vadd.f32 %v1226_v31, %v1088_v46  ;;  %v1451_v37 = vsub.f32 1.0, %v2421_v36  ;;  %v1609_v15 = vmul.f32 %v2235_v30, %v3669_v57 }
 0x1f6   : > { %2424 = vpow2.f32 %v1430_v2 }
 0x1f7   : > { %v1324_v52 = vadd.f32 %v1323_v22, %v1227_v17  ;;  %v1577_v22 = vmul.f32 %v2171_v54, %v3669_v57  ;;  %v1408_v54 = vsub.f32 0.0, %v3410_v9 }
 0x1f8   : > { %v968_v45 = vpop.f32.mrf.mxu2  ;;  %v1099_v31 = vpop.f32.mrf.mxu3 }
 0x1f9   : > { %1742 = vadd.xlane.f32.xlu0 %v1720_v61  ;;  %1740 = vadd.xlane.f32.xlu2 %v1719_v42  ;;  %v1356_v24 = vsub.f32 0.0, %v1324_v52  ;;  %v969_v20 = vadd.f32 %v968_v45, %v3557_v33  ;;  %v1608_v33 = vmul.f32 %v2234_v16, %v3655_v39  ;;  %v2206_v39 = vunpack.c.l.bf16 %v3697_v4 }
 0x1fa   : > { %1662 = vadd.xlane.f32.xlu1 %v1592_v26  ;;  %v2175_v52 = vunpack.c.h.bf16 %v2255_v6  ;;  %v2174_v26 = vunpack.c.l.bf16 %v2255_v6 }
 0x1fb   : > { %v2423_v41 = vpop.eup %2422  ;;  %v1382_v28 = vmul.f32 1.442695, %v1356_v24  ;;  %v1094_v51 = vadd.f32 %v1093_v13, %v969_v20  ;;  %v1234_v43 = vpop.f32.mrf.mxu0  ;;  %v1436_v20 = vmul.f32 1.442695, %v1407_v50 }
 0x1fc   : > { %v3691_v49 = vmul.f32 %v2423_v41, %v1451_v37  ;;  %v2425_v8 = vpop.eup %2424  ;;  %v1335_v36 = vpop.f32.mrf.mxu1  ;;  %v1578_v30 = vmul.f32 %v2174_v26, %v3680_v38 }
 0x1fd   : > { %2426 = vpow2.f32 %v1382_v28  ;;  %v1231_v47 = vadd.f32 %v1230_v21, %v1094_v51  ;;  %v1452_v63 = vsub.f32 1.0, %v2425_v8  ;;  %v1721_v21 = vmul.f32 %v2455_v59, %v3669_v57 }
 0x1fe   : > { %2428 = vpow2.f32 %v1432_v14  ;;  %v1579_v11 = vmul.f32 %v2175_v52, %v3691_v49 }
 0x1ff   : > { %v1328_v25 = vadd.f32 %v1327_v29, %v1231_v47  ;;  %v3711_v29 = vld [vmem:[%s2817_s24 + $0xa0] sm:$0xff]  }
 0x200   : > { %v973_v56 = vpop.f32.mrf.mxu2  ;;  %v1105_v13 = vpop.f32.mrf.mxu3  ;;  %v2238_v55 = vunpack.c.l.bf16 %v3711_v29 }
 0x201   : > { %1696 = vadd.xlane.f32.xlu0 %v1609_v15  ;;  %1694 = vadd.xlane.f32.xlu2 %v1608_v33  ;;  %v1357_v40 = vsub.f32 0.0, %v1328_v25  ;;  %v974_v19 = vadd.f32 %v973_v56, %v3566_v5  ;;  %v1594_v5 = vmul.f32 %v2206_v39, %v3680_v38  ;;  %v2207_v25 = vunpack.c.h.bf16 %v3697_v4 }
 0x202   : > { %1632 = vadd.xlane.f32.xlu1 %v1577_v22  ;;  %v1610_v41 = vmul.f32 %v2238_v55, %v3680_v38  ;;  %v1438_v56 = vmul.f32 1.442695, %v1408_v54 }
 0x203   : > { %v2427_v58 = vpop.eup %2426  ;;  %v1384_v60 = vmul.f32 1.442695, %v1357_v40  ;;  %v1100_v53 = vadd.f32 %v1099_v31, %v974_v19  ;;  %v1238_v2 = vpop.f32.mrf.mxu0  ;;  %v1723_v40 = vmul.f32 %v2456_v27, %v3691_v49  ;;  %v1595_v23 = vmul.f32 %v2207_v25, %v3691_v49 }
 0x204   : > { %v3703_v44 = vmul.f32 %v2427_v58, %v1452_v63  ;;  %v2429_v32 = vpop.eup %2428  ;;  %v1339_v22 = vpop.f32.mrf.mxu1  ;;  %v3732_v58 = vld [vmem:[%s2817_s24 + $0xa8] sm:$0xff]   ;;  %v1811_v25 = vadd.s32 4294967288, %v3117_v12 }
 0x205   : > { %2430 = vpow2.f32 %v1384_v60  ;;  %v1235_v18 = vadd.f32 %v1234_v43, %v1100_v53  ;;  %v1453_v42 = vsub.f32 1.0, %v2429_v32  ;;  %v2256_v60 = vld [vmem:[%s2817_s24 + $0x28] sm:$0xff]   ;;  %v1409_v53 = vsub.f32 0.0, %v3448_v35 }
 0x206   : > { %2432 = vpow2.f32 %v1434_v10 }
 0x207   : > { %v1332_v46 = vadd.f32 %v1331_v1, %v1235_v18 }
 0x208   : > { %v978_v17 = vpop.f32.mrf.mxu2  ;;  %v1111_v28 = vpop.f32.mrf.mxu3 }
 0x209   : > { %1666 = vadd.xlane.f32.xlu0 %v1594_v5  ;;  %1664 = vadd.xlane.f32.xlu2 %v1593_v48  ;;  %v1358_v61 = vsub.f32 0.0, %v1332_v46  ;;  %v979_v7 = vadd.f32 %v978_v17, %v3575_v34  ;;  %v2239_v48 = vunpack.c.h.bf16 %v3711_v29  ;;  %v1440_v17 = vmul.f32 1.442695, %v1409_v53 }
 0x20a   : > { %1744 = vadd.xlane.f32.xlu1 %v1721_v21  ;;  %v2178_v21 = vunpack.c.l.bf16 %v2256_v60 }
 0x20b   : > { %v2431_v62 = vpop.eup %2430  ;;  %v1386_v57 = vmul.f32 1.442695, %v1358_v61  ;;  %v1106_v45 = vadd.f32 %v1105_v13, %v979_v7  ;;  %v1242_v43 = vpop.f32.mrf.mxu0  ;;  %v1611_v61 = vmul.f32 %v2239_v48, %v3691_v49 }
 0x20c   : > { %v3716_v24 = vmul.f32 %v2431_v62, %v1453_v42  ;;  %v2433_v34 = vpop.eup %2432  ;;  %v1343_v50 = vpop.f32.mrf.mxu1  ;;  %v1580_v29 = vmul.f32 %v2178_v21, %v3703_v44 }
 0x20d   : > { %2434 = vpow2.f32 %v1386_v57  ;;  %v1239_v37 = vadd.f32 %v1238_v2, %v1106_v45  ;;  %v1454_v47 = vsub.f32 1.0, %v2433_v34 }
 0x20e   : > { %2436 = vpow2.f32 %v1436_v20 }
 0x20f   : > { %v1336_v16 = vadd.f32 %v1335_v36, %v1239_v37  ;;  %v2264_v36 = vld [vmem:[%s2817_s24 + $0x68] sm:$0xff]  }
 0x210   : > { %v983_v51 = vpop.f32.mrf.mxu2  ;;  %v1117_v5 = vpop.f32.mrf.mxu3  ;;  %v2211_v62 = vunpack.c.h.bf16 %v2264_v36  ;;  %v2210_v57 = vunpack.c.l.bf16 %v2264_v36 }
 0x211   : > { %1636 = vadd.xlane.f32.xlu0 %v1579_v11  ;;  %1634 = vadd.xlane.f32.xlu2 %v1578_v30  ;;  %v1359_v31 = vsub.f32 0.0, %v1336_v16  ;;  %v984_v14 = vadd.f32 %v983_v51, %v3584_v3  ;;  %v2457_v3 = vld [vmem:[%s2807_s30 + $0x40] sm:$0xff]  ;;  %v2458_v30 = vld [vmem:[%s2807_s30 + $0x50] sm:$0xff]  ;;  %v2179_v51 = vunpack.c.h.bf16 %v2256_v60 }
 0x212   : > { %1698 = vadd.xlane.f32.xlu1 %v1610_v41  ;;  %v1722_v19 = vmul.f32 %v2457_v3, %v3680_v38  ;;  %v2242_v38 = vunpack.c.l.bf16 %v3732_v58  ;;  %v1597_v49 = vmul.f32 %v2211_v62, %v3716_v24  ;;  %v1596_v37 = vmul.f32 %v2210_v57, %v3703_v44  ;;  %v3752_v16 = vld [vmem:[%s2817_s24 + $0x30] sm:$0xff]  }
 0x213   : > { %v2435_v15 = vpop.eup %2434  ;;  %v1388_v33 = vmul.f32 1.442695, %v1359_v31  ;;  %v1112_v8 = vadd.f32 %v1111_v28, %v984_v14  ;;  %v1246_v6 = vpop.f32.mrf.mxu0  ;;  %v1724_v34 = vmul.f32 %v2458_v30, %v3703_v44  ;;  %v2182_v28 = vunpack.c.l.bf16 %v3752_v16 }
 0x214   : > { %v3724_v1 = vmul.f32 %v2435_v15, %v1454_v47  ;;  %v2437_v63 = vpop.eup %2436  ;;  %v2243_v47 = vunpack.c.h.bf16 %v3732_v58 }
 0x215   : > { %2438 = vpow2.f32 %v1388_v33  ;;  %v1243_v9 = vadd.f32 %v1242_v43, %v1112_v8  ;;  %v1455_v13 = vsub.f32 1.0, %v2437_v63  ;;  %v1581_v33 = vmul.f32 %v2179_v51, %v3716_v24 }
 0x216   : > { %2440 = vpow2.f32 %v1438_v56  ;;  %v1613_v8 = vmul.f32 %v2243_v47, %v3716_v24  ;;  %v2273_v56 = vld [vmem:[%s2817_s24 + $0xb0] sm:$0xff]  }
 0x217   : > { %v1340_v39 = vadd.f32 %v1339_v22, %v1243_v9  ;;  %v2265_v22 = vld [vmem:[%s2817_s24 + $0x70] sm:$0xff]   ;;  %v2247_v9 = vunpack.c.h.bf16 %v2273_v56 }
 0x218   : > { %v988_v4 = vpop.f32.mrf.mxu2  ;;  %v2214_v3 = vunpack.c.l.bf16 %v2265_v22  ;;  %v2215_v62 = vunpack.c.h.bf16 %v2265_v22 }
 0x219   : > { %1748 = vadd.xlane.f32.xlu0 %v1723_v40  ;;  %1746 = vadd.xlane.f32.xlu2 %v1722_v19  ;;  %v1360_v10 = vsub.f32 0.0, %v1340_v39  ;;  %v989_v18 = vadd.f32 %v988_v4, %v3590_v0  ;;  %v1612_v0 = vmul.f32 %v2242_v38, %v3703_v44  ;;  %v1582_v44 = vmul.f32 %v2182_v28, %v3724_v1 }
 0x21a   : > { %1668 = vadd.xlane.f32.xlu1 %v1595_v23  ;;  %v2246_v38 = vunpack.c.l.bf16 %v2273_v56 }
 0x21b   : > { %v2439_v32 = vpop.eup %2438  ;;  %v1390_v46 = vmul.f32 1.442695, %v1360_v10  ;;  %v1118_v59 = vadd.f32 %v1117_v5, %v989_v18  ;;  %v2459_v10 = vld [vmem:[%s2807_s30 + $0x58] sm:$0xff]  ;;  %v1815_v5 = vadd.s32 4294967280, %v3117_v12 }
 0x21c   : > { %v3739_v2 = vmul.f32 %v2439_v32, %v1455_v13  ;;  %v2441_v7 = vpop.eup %2440  ;;  %v1725_v18 = vmul.f32 %v2459_v10, %v3716_v24  ;;  %v1598_v13 = vmul.f32 %v2214_v3, %v3724_v1 }
 0x21d   : > { %2442 = vpow2.f32 %v1390_v46  ;;  %v1247_v35 = vadd.f32 %v1246_v6, %v1118_v59  ;;  %v1456_v26 = vsub.f32 1.0, %v2441_v7  ;;  %v1614_v7 = vmul.f32 %v2246_v38, %v3724_v1 }
 0x21e   : > { %2444 = vpow2.f32 %v1440_v17  ;;  %v1615_v53 = vmul.f32 %v2247_v9, %v3739_v2  ;;  %v1599_v28 = vmul.f32 %v2215_v62, %v3739_v2 }
 0x21f   : > { %v1344_v42 = vadd.f32 %v1343_v50, %v1247_v35 }
 0x221   : > { %1702 = vadd.xlane.f32.xlu0 %v1612_v0  ;;  %1700 = vadd.xlane.f32.xlu2 %v1611_v61  ;;  %v1361_v52 = vsub.f32 0.0, %v1344_v42  ;;  %v2460_v0 = vld [vmem:[%s2807_s30 + $0x68] sm:$0xff] }
 0x222   : > { %1638 = vadd.xlane.f32.xlu1 %v1580_v29  ;;  %v1727_v61 = vmul.f32 %v2460_v0, %v3739_v2  ;;  %v2461_v29 = vld [vmem:[%s2807_s30 + $0x60] sm:$0xff] }
 0x223   : > { %v2443_v45 = vpop.eup %2442  ;;  %v1392_v55 = vmul.f32 1.442695, %v1361_v52  ;;  %v1726_v36 = vmul.f32 %v2461_v29, %v3724_v1  ;;  %v2266_v52 = vld [vmem:[%s2817_s24 + $0x78] sm:$0xff]  }
 0x224   : > { %v3745_v20 = vmul.f32 %v2443_v45, %v1456_v26  ;;  %v2445_v11 = vpop.eup %2444  ;;  %v2218_v26 = vunpack.c.l.bf16 %v2266_v52 }
 0x225   : > { %2446 = vpow2.f32 %v1392_v55  ;;  %v1457_v41 = vsub.f32 1.0, %v2445_v11  ;;  %v2183_v55 = vunpack.c.h.bf16 %v3752_v16  ;;  %v1819_v16 = vadd.s32 4294967272, %v3117_v12 }
 0x226   : > { %v1600_v1 = vmul.f32 %v2218_v26, %v3745_v20 }
 0x229   : > { %1672 = vadd.xlane.f32.xlu0 %v1597_v49  ;;  %1670 = vadd.xlane.f32.xlu2 %v1596_v37 }
 0x22a   : > { %1750 = vadd.xlane.f32.xlu1 %v1724_v34 }
 0x22b   : > { %v2447_v54 = vpop.eup %2446 }
 0x22c   : > { %v1731_v31 = vpop.xlane.xlu0 %1730  ;;  %v1683_v14 = vpop.xlane.xlu2 %1682  ;;  %v3756_v15 = vmul.f32 %v2447_v54, %v1457_v41  ;;  %v1583_v54 = vmul.f32 %v2183_v55, %v3739_v2 }
 0x22d   : > { %v1619_v43 = vpop.xlane.xlu1 %1618  ;;  %v1902_v19 = vperm.slane %v1683_v14, %v3117_v12  ;;  %v1955_v24 = vperm.slane %v1731_v31, %v3117_v12  ;;  %v2258_v31 = vld [vmem:[%s2817_s24 + $0x38] sm:$0xff]  }
 0x22e   : > { %v1810_v63 = vperm.slane %v1619_v43, %v3117_v12  ;;  %v2186_v14 = vunpack.c.l.bf16 %v2258_v31  ;;  %v2187_v47 = vunpack.c.h.bf16 %v2258_v31 }
 0x231   : > { %1642 = vadd.xlane.f32.xlu0 %v1582_v44  ;;  %1640 = vadd.xlane.f32.xlu2 %v1581_v33  ;;  %v2219_v33 = vunpack.c.h.bf16 %v2266_v52  ;;  %v1831_v52 = vadd.s32 4294967248, %v3117_v12 }
 0x232   : > { %1704 = vadd.xlane.f32.xlu1 %v1613_v8 }
 0x234   : > { %v1685_v27 = vpop.xlane.xlu0 %1684  ;;  %v1621_v40 = vpop.xlane.xlu2 %1620 }
 0x235   : > { %v1903_v39 = vperm.slane %v1685_v27, %v1811_v25  ;;  %v1812_v23 = vperm.slane %v1621_v40, %v1811_v25  ;;  %v1651_v58 = vpop.xlane.xlu1 %1650  ;;  %v1584_v27 = vmul.f32 %v2186_v14, %v3745_v20  ;;  %v1585_v40 = vmul.f32 %v2187_v47, %v3756_v15 }
 0x236   : > { %v1871_v46 = vperm.slane %v1651_v58, %v3117_v12  ;;  %v1835_v14 = vadd.s32 4294967240, %v3117_v12 }
 0x237   : > { %v1904_v4 = vsel %vm1813_vm2, %v1903_v39, %v1902_v19  ;;  %v1814_v60 = vsel %vm1813_vm2, %v1812_v23, %v1810_v63  ;;  %v1601_v19 = vmul.f32 %v2219_v33, %v3756_v15  ;;  %v2274_v63 = vld [vmem:[%s2817_s24 + $0xb8] sm:$0xff]   ;;  %v1823_v39 = vadd.s32 4294967264, %v3117_v12 }
 0x238   : > { %v2250_v23 = vunpack.c.l.bf16 %v2274_v63 }
 0x239   : > { %1708 = vadd.xlane.f32.xlu0 %v1615_v53  ;;  %1752 = vadd.xlane.f32.xlu2 %v1725_v18 }
 0x23a   : > { %1674 = vadd.xlane.f32.xlu1 %v1598_v13  ;;  %v1616_v38 = vmul.f32 %v2250_v23, %v3745_v20 }
 0x23c   : > { %v1623_v48 = vpop.xlane.xlu0 %1622  ;;  %v1653_v32 = vpop.xlane.xlu2 %1652 }
 0x23d   : > { %v1816_v59 = vperm.slane %v1623_v48, %v1815_v5  ;;  %v1872_v21 = vperm.slane %v1653_v32, %v1811_v25  ;;  %v1733_v6 = vpop.xlane.xlu1 %1732  ;;  %v2462_v48 = vld [vmem:[%s2807_s30 + $0x78] sm:$0xff] }
 0x23e   : > { %v1956_v17 = vperm.slane %v1733_v6, %v1811_v25  ;;  %v1729_v32 = vmul.f32 %v2462_v48, %v3756_v15  ;;  %v1827_v6 = vadd.s32 4294967256, %v3117_v12 }
 0x23f   : > { %v1818_v35 = vsel %vm1817_vm3, %v1816_v59, %v1814_v60  ;;  %v1873_v50 = vsel %vm1813_vm2, %v1872_v21, %v1871_v46  ;;  %v2251_v60 = vunpack.c.h.bf16 %v2274_v63 }
 0x240   : > { %v1957_v42 = vsel %vm1813_vm2, %v1956_v17, %v1955_v24  ;;  %vm1935_vm2 = vcmask 1042434  }
 0x241   : > { %1756 = vadd.xlane.f32.xlu0 %v1727_v61  ;;  %1706 = vadd.xlane.f32.xlu2 %v1614_v7  ;;  %v1617_v59 = vmul.f32 %v2251_v60, %v3756_v15 }
 0x242   : > { %1754 = vadd.xlane.f32.xlu1 %v1726_v36 }
 0x244   : > { %v1655_v57 = vpop.xlane.xlu0 %1654  ;;  %v1735_v45 = vpop.xlane.xlu2 %1734 }
 0x245   : > { %v1874_v49 = vperm.slane %v1655_v57, %v1815_v5  ;;  %v1958_v37 = vperm.slane %v1735_v45, %v1815_v5  ;;  %v1687_v11 = vpop.xlane.xlu1 %1686 }
 0x246   : > { %v1905_v30 = vperm.slane %v1687_v11, %v1815_v5 }
 0x247   : > { %v1875_v34 = vsel %vm1817_vm3, %v1874_v49, %v1873_v50  ;;  %v1959_v41 = vsel %vm1817_vm3, %v1958_v37, %v1957_v42  ;;  %v2463_v42 = vld [vmem:[%s2807_s30 + $0x70] sm:$0xff] }
 0x248   : > { %v1906_v51 = vsel %vm1817_vm3, %v1905_v30, %v1904_v4  ;;  %v1728_v29 = vmul.f32 %v2463_v42, %v3745_v20 }
 0x249   : > { %1678 = vadd.xlane.f32.xlu0 %v1600_v1  ;;  %1676 = vadd.xlane.f32.xlu2 %v1599_v28 }
 0x24a   : > { %1644 = vadd.xlane.f32.xlu1 %v1583_v54 }
 0x24c   : > { %v1737_v43 = vpop.xlane.xlu0 %1736  ;;  %v1625_v44 = vpop.xlane.xlu2 %1624 }
 0x24d   : > { %v1960_v8 = vperm.slane %v1737_v43, %v1819_v16  ;;  %v1820_v25 = vperm.slane %v1625_v44, %v1819_v16  ;;  %v1657_v22 = vpop.xlane.xlu1 %1656 }
 0x24e   : > { %v1876_v56 = vperm.slane %v1657_v22, %v1819_v16 }
 0x24f   : > { %v1961_v9 = vsel %vm1821_vm4, %v1960_v8, %v1959_v41  ;;  %v1822_v2 = vsel %vm1821_vm4, %v1820_v25, %v1818_v35 }
 0x250   : > { %v1877_v3 = vsel %vm1821_vm4, %v1876_v56, %v1875_v34 }
 0x251   : > { %1646 = vadd.xlane.f32.xlu2 %v1584_v27  ;;  %1648 = vadd.xlane.f32.xlu0 %v1585_v40 }
 0x252   : > { %1680 = vadd.xlane.f32.xlu1 %v1601_v19 }
 0x254   : > { %v1691_v58 = vpop.xlane.xlu0 %1690  ;;  %v1689_v4 = vpop.xlane.xlu2 %1688 }
 0x255   : > { %v1909_v53 = vperm.slane %v1691_v58, %v1823_v39  ;;  %v1907_v10 = vperm.slane %v1689_v4, %v1819_v16  ;;  %v1627_v18 = vpop.xlane.xlu1 %1626 }
 0x256   : > { %v1824_v13 = vperm.slane %v1627_v18, %v1823_v39 }
 0x257   : > { %v1908_v5 = vsel %vm1821_vm4, %v1907_v10, %v1906_v51 }
 0x258   : > { %v1826_v46 = vsel %vm1825_vm5, %v1824_v13, %v1822_v2  ;;  %v1910_v21 = vsel %vm1825_vm5, %v1909_v53, %v1908_v5  ;;  %v1839_v2 = vadd.s32 4294967232, %v3117_v12 }
 0x259   : > { %1710 = vadd.xlane.f32.xlu2 %v1616_v38  ;;  %1760 = vadd.xlane.f32.xlu0 %v1729_v32 }
 0x25a   : > { %1712 = vadd.xlane.f32.xlu1 %v1617_v59 }
 0x25c   : > { %v1661_v24 = vpop.xlane.xlu0 %1660  ;;  %v1659_v17 = vpop.xlane.xlu2 %1658 }
 0x25d   : > { %v1880_v35 = vperm.slane %v1661_v24, %v1827_v6  ;;  %v1878_v50 = vperm.slane %v1659_v17, %v1823_v39  ;;  %v1739_v0 = vpop.xlane.xlu1 %1738 }
 0x25e   : > { %v1962_v61 = vperm.slane %v1739_v0, %v1823_v39 }
 0x25f   : > { %v1879_v7 = vsel %vm1825_vm5, %v1878_v50, %v1877_v3 }
 0x260   : > { %v1963_v15 = vsel %vm1825_vm5, %v1962_v61, %v1961_v9  ;;  %v1881_v36 = vsel %vm1829_vm6, %v1880_v35, %v1879_v7 }
 0x261   : > { %1758 = vadd.xlane.f32.xlu2 %v1728_v29 }
 0x264   : > { %v1631_v26 = vpop.xlane.xlu0 %1630  ;;  %v1629_v62 = vpop.xlane.xlu2 %1628 }
 0x265   : > { %v1832_v57 = vperm.slane %v1631_v26, %v1831_v52  ;;  %v1828_v45 = vperm.slane %v1629_v62, %v1827_v6  ;;  %v1693_v55 = vpop.xlane.xlu1 %1692 }
 0x266   : > { %v1911_v49 = vperm.slane %v1693_v55, %v1827_v6 }
 0x267   : > { %v1830_v37 = vsel %vm1829_vm6, %v1828_v45, %v1826_v46  ;;  %v3853_v45 = vadd.s32 4294967216, %v3117_v12 }
 0x268   : > { %v1912_v11 = vsel %vm1829_vm6, %v1911_v49, %v1910_v21  ;;  %v1834_v20 = vsel %vm1833_vm7, %v1832_v57, %v1830_v37  ;;  %v3850_v57 = vadd.s32 4294967224, %v3117_v12  ;;  %v3857_v49 = vadd.s32 4294967208, %v3117_v12 }
 0x269   : > { %v2638_v37 = vmov 0.0  }
 0x26a   : > { %1988 = vst [vmem:[%s3859_s9 + $0x4] sm:$0xf] %v2638_v37 }
 0x26c   : > { %v1743_v30 = vpop.xlane.xlu0 %1742  ;;  %v1741_v34 = vpop.xlane.xlu2 %1740 }
 0x26d   : > { %v1966_v41 = vperm.slane %v1743_v30, %v1831_v52  ;;  %v1964_v1 = vperm.slane %v1741_v34, %v1827_v6  ;;  %v1663_v28 = vpop.xlane.xlu1 %1662 }
 0x26e   : > { %v1882_v51 = vperm.slane %v1663_v28, %v1831_v52 }
 0x26f   : > { %v1965_v54 = vsel %vm1829_vm6, %v1964_v1, %v1963_v15  ;;  %v3866_v1 = vadd.s32 4294967200, %v3117_v12 }
 0x270   : > { %v1883_v31 = vsel %vm1833_vm7, %v1882_v51, %v1881_v36  ;;  %v1967_v16 = vsel %vm1833_vm7, %v1966_v41, %v1965_v54 }
 0x274   : > { %v1697_v47 = vpop.xlane.xlu0 %1696  ;;  %v1695_v43 = vpop.xlane.xlu2 %1694 }
 0x275   : > { %v1915_v44 = vperm.slane %v1697_v47, %v1835_v14  ;;  %v1913_v33 = vperm.slane %v1695_v43, %v1831_v52  ;;  %v1633_v8 = vpop.xlane.xlu1 %1632  ;;  %v3877_v43 = vadd.s32 4294967184, %v3117_v12 }
 0x276   : > { %v1836_v25 = vperm.slane %v1633_v8, %v1835_v14 }
 0x277   : > { %v1914_v22 = vsel %vm1833_vm7, %v1913_v33, %v1912_v11 }
 0x278   : > { %v1838_v56 = vsel %vm1837_vm8, %v1836_v25, %v1834_v20  ;;  %v1916_v9 = vsel %vm1837_vm8, %v1915_v44, %v1914_v22 }
 0x27c   : > { %v1667_v27 = vpop.xlane.xlu0 %1666  ;;  %v1665_v40 = vpop.xlane.xlu2 %1664 }
 0x27d   : > { %v1886_v3 = vperm.slane %v1667_v27, %v1839_v2  ;;  %v1884_v19 = vperm.slane %v1665_v40, %v1835_v14  ;;  %v1745_v63 = vpop.xlane.xlu1 %1744 }
 0x27e   : > { %v1968_v39 = vperm.slane %v1745_v63, %v1835_v14 }
 0x27f   : > { %v1885_v23 = vsel %vm1837_vm8, %v1884_v19, %v1883_v31 }
 0x280   : > { %v1969_v58 = vsel %vm1837_vm8, %v1968_v39, %v1967_v16  ;;  %v1887_v4 = vsel %vm1841_vm9, %v1886_v3, %v1885_v23  ;;  %v3872_v16 = vadd.s32 4294967192, %v3117_v12 }
 0x284   : > { %v1637_v60 = vpop.xlane.xlu0 %1636  ;;  %v1635_v53 = vpop.xlane.xlu2 %1634 }
 0x285   : > { %v1840_v10 = vperm.slane %v1635_v53, %v1839_v2  ;;  %v1699_v18 = vpop.xlane.xlu1 %1698  ;;  %v1844_v20 = vperm.slane %v1637_v60, %v3850_v57 }
 0x286   : > { %v1917_v13 = vperm.slane %v1699_v18, %v1839_v2 }
 0x287   : > { %v1842_v5 = vsel %vm1841_vm9, %v1840_v10, %v1838_v56  ;;  %v3885_v56 = vadd.s32 4294967176, %v3117_v12 }
 0x288   : > { %v1918_v38 = vsel %vm1841_vm9, %v1917_v13, %v1916_v9  ;;  %v1846_v33 = vsel %vm1845_vm10, %v1844_v20, %v1842_v5 }
 0x28c   : > { %v3827_v48 = vpop.xlane.xlu0 %1748  ;;  %v1747_v32 = vpop.xlane.xlu2 %1746 }
 0x28d   : > { %v1970_v46 = vperm.slane %v1747_v32, %v1839_v2  ;;  %v1669_v59 = vpop.xlane.xlu1 %1668 }
 0x28e   : > { %v1888_v55 = vperm.slane %v1669_v59, %v3850_v57 }
 0x28f   : > { %v3830_v21 = vsel %vm1841_vm9, %v1970_v46, %v1969_v58 }
 0x290   : > { %v1889_v51 = vsel %vm1845_vm10, %v1888_v55, %v1887_v4 }
 0x294   : > { %v3832_v6 = vpop.xlane.xlu0 %1702  ;;  %v1701_v24 = vpop.xlane.xlu2 %1700 }
 0x295   : > { %v1639_v17 = vpop.xlane.xlu1 %1638  ;;  %v1919_v44 = vperm.slane %v1701_v24, %v3850_v57  ;;  %v1921_v19 = vperm.slane %v3832_v6, %v3853_v45 }
 0x296   : > { %v1848_v41 = vperm.slane %v1639_v17, %v3853_v45 }
 0x297   : > { %v1920_v63 = vsel %vm1845_vm10, %v1919_v44, %v1918_v38 }
 0x298   : > { %v1850_v25 = vsel %vm1849_vm11, %v1848_v41, %v1846_v33  ;;  %v1922_v6 = vsel %vm1849_vm11, %v1921_v19, %v1920_v63 }
 0x29c   : > { %v1673_v35 = vpop.xlane.xlu0 %1672  ;;  %v1671_v50 = vpop.xlane.xlu2 %1670 }
 0x29d   : > { %v3834_v0 = vpop.xlane.xlu1 %1750  ;;  %v1890_v11 = vperm.slane %v1671_v50, %v3853_v45  ;;  %v1892_v54 = vperm.slane %v1673_v35, %v3857_v49  ;;  %v1972_v50 = vperm.slane %v3827_v48, %v3850_v57 }
 0x29f   : > { %v1891_v14 = vsel %vm1849_vm11, %v1890_v11, %v1889_v51 }
 0x2a0   : > { %v1893_v2 = vsel %vm1853_vm12, %v1892_v54, %v1891_v14 }
 0x2a4   : > { %v1643_v61 = vpop.xlane.xlu0 %1642  ;;  %v1641_v7 = vpop.xlane.xlu2 %1640 }
 0x2a5   : > { %v3836_v42 = vpop.xlane.xlu1 %1704  ;;  %v1852_v31 = vperm.slane %v1641_v7, %v3857_v49  ;;  %v1856_v22 = vperm.slane %v1643_v61, %v3866_v1 }
 0x2a6   : > { %v1923_v10 = vperm.slane %v3836_v42, %v3857_v49  ;;  %v1974_v42 = vperm.slane %v3834_v0, %v3853_v45  ;;  %v1973_v0 = vsel %vm1845_vm10, %v1972_v50, %v3830_v21 }
 0x2a7   : > { %v1854_v9 = vsel %vm1853_vm12, %v1852_v31, %v1850_v25 }
 0x2a8   : > { %v1858_v58 = vsel %vm1857_vm13, %v1856_v22, %v1854_v9  ;;  %v1924_v17 = vsel %vm1853_vm12, %v1923_v10, %v1922_v6  ;;  %v1975_v11 = vsel %vm1849_vm11, %v1974_v42, %v1973_v0 }
 0x2ac   : > { %v3838_v29 = vpop.xlane.xlu0 %1708  ;;  %v3840_v15 = vpop.xlane.xlu2 %1752 }
 0x2ad   : > { %v1675_v36 = vpop.xlane.xlu1 %1674  ;;  %v1927_v61 = vperm.slane %v3838_v29, %v3872_v16  ;;  %v1976_v55 = vperm.slane %v3840_v15, %v3857_v49 }
 0x2ae   : > { %v1894_v47 = vperm.slane %v1675_v36, %v3866_v1 }
 0x2af   : > { %v1977_v49 = vsel %vm1853_vm12, %v1976_v55, %v1975_v11 }
 0x2b0   : > { %v1895_v40 = vsel %vm1857_vm13, %v1894_v47, %v1893_v2 }
 0x2b4   : > { %v3842_v52 = vpop.xlane.xlu0 %1756  ;;  %v3844_v26 = vpop.xlane.xlu2 %1706 }
 0x2b5   : > { %v3846_v62 = vpop.xlane.xlu1 %1754  ;;  %v1925_v5 = vperm.slane %v3844_v26, %v3866_v1 }
 0x2b6   : > { %v1978_v29 = vperm.slane %v3846_v62, %v3866_v1  ;;  %v1980_v62 = vperm.slane %v3842_v52, %v3872_v16 }
 0x2b7   : > { %v1926_v35 = vsel %vm1857_vm13, %v1925_v5, %v1924_v17 }
 0x2b8   : > { %v1928_v37 = vsel %vm1861_vm14, %v1927_v61, %v1926_v35  ;;  %v1979_v20 = vsel %vm1857_vm13, %v1978_v29, %v1977_v49 }
 0x2b9   : > { %v1981_v1 = vsel %vm1861_vm14, %v1980_v62, %v1979_v20 }
 0x2bc   : > { %v1679_v30 = vpop.xlane.xlu0 %1678  ;;  %v1677_v34 = vpop.xlane.xlu2 %1676 }
 0x2bd   : > { %v1645_v28 = vpop.xlane.xlu1 %1644  ;;  %v1896_v8 = vperm.slane %v1677_v34, %v3872_v16  ;;  %v1898_v3 = vperm.slane %v1679_v30, %v3877_v43 }
 0x2be   : > { %v1860_v27 = vperm.slane %v1645_v28, %v3872_v16 }
 0x2bf   : > { %v1897_v12 = vsel %vm1861_vm14, %v1896_v8, %v1895_v40 }
 0x2c0   : > { %v1862_v18 = vsel %vm1861_vm14, %v1860_v27, %v1858_v58  ;;  %v1899_v32 = vsel %vm1865_vm15, %v1898_v3, %v1897_v12 }
 0x2c4   : > { %v1647_v39 = vpop.xlane.xlu2 %1646  ;;  %v1649_v23 = vpop.xlane.xlu0 %1648 }
 0x2c5   : > { %v1864_v4 = vperm.slane %v1647_v39, %v3877_v43  ;;  %v1681_v60 = vpop.xlane.xlu1 %1680  ;;  %v1868_v53 = vperm.slane %v1649_v23, %v3885_v56 }
 0x2c6   : > { %v1900_v13 = vperm.slane %v1681_v60, %v3885_v56 }
 0x2c7   : > { %v1866_v38 = vsel %vm1865_vm15, %v1864_v4, %v1862_v18 }
 0x2c8   : > { %v1901_v46 = vsel %vm1869_vm0, %v1900_v13, %v1899_v32  ;;  %v1870_v59 = vsel %vm1869_vm0, %v1868_v53, %v1866_v38 }
 0x2c9   : > { %v1934_v24 = vsel %vm1933_vm1, %v1901_v46, %v1870_v59 }
 0x2cc   : > { %v1711_v7 = vpop.xlane.xlu2 %1710  ;;  %v1761_v21 = vpop.xlane.xlu0 %1760 }
 0x2cd   : > { %v1929_v36 = vperm.slane %v1711_v7, %v3877_v43  ;;  %v1713_v26 = vpop.xlane.xlu1 %1712  ;;  %v1984_v41 = vperm.slane %v1761_v21, %v3885_v56 }
 0x2ce   : > { %v1931_v48 = vperm.slane %v1713_v26, %v3885_v56 }
 0x2cf   : > { %v1930_v57 = vsel %vm1865_vm15, %v1929_v36, %v1928_v37 }
 0x2d0   : > { %v1932_v45 = vsel %vm1869_vm0, %v1931_v48, %v1930_v57 }
 0x2d1   : > { %v1936_v15 = vsel %vm1935_vm2, %v1932_v45, %v1934_v24 }
 0x2d2   : > { %1938 = vst [vmem:[%s3859_s9] sm:$0x7] %v1936_v15 }
 0x2d4   : > { %v1759_v30 = vpop.xlane.xlu2 %1758 }
 0x2d5   : > { %v1982_v34 = vperm.slane %v1759_v30, %v3877_v43 }
 0x2d7   : > { %v1983_v28 = vsel %vm1865_vm15, %v1982_v34, %v1981_v1 }
 0x2d8   : > { %v1985_v52 = vsel %vm1869_vm0, %v1984_v41, %v1983_v28 }
 0x2d9   : > { %1987 = vst [vmem:[%s3859_s9 + $0x3] sm:$0x1] %v1985_v52 }
 0x2da   : > { %2577 = shalt.err (!%p2574_p8)
}
 0x2db   : > { %2326 = dma.vmem_to_hbm [thread:$0]  (%p2716_p11), %s2003_s19, 128, %s2005_s23, %s1990_s20  }
 0x2dc PF: > { %s2016_s30 = sand.u32 1, %s2612_s15   ;;  %p2333_p9 = pnand %p2133_p2, %p2720_p12 }
 0x2dd   : > { %s2017_s29 = scalar_lea.sflag [#allocation4], %s2016_s30 }
 0x2de   : > { %p2334_p10 = pneg %p2333_p9 }
 0x2e0   : > { %2607 = dma.done.wait (%p2334_p10), %s2017_s29, 128  }
 0x2e1   : > { %2609 = vsyncadd (%p2334_p10), %s2017_s29, 4294967168  ;;  %s4028_s18 = sld [smem:[#allocation19_spill]]  ;;  %s4031_s15 = smov %s2616_s16 }
 0x2e2   : > { %s4029_s0 = sld [smem:[#allocation18_spill]] }
 0x2e3   : > { %s4030_s17 = sld [smem:[#allocation20_spill]] }
 0x2e7   : > { %p21_p1 = scmp.ge.s32.totalorder %s4028_s18, 4  }
 0x2e8   : > { %s4032_s16 = smov %s4029_s0 }
 0x2e9   :  { %23 = sbr.rel (!%p21_p1) target bundleno = 10 (0xa), region = 115 }
 0x2ee   :  { %2023 = vsyncpa [#allocation3], 1 }
 0x2ef   :  { %2025 = vsyncpa [#allocation3 + $0x1], 1 }
 0x2f0   :  { %2026 = vsyncpa [#allocation6], 1 }
 0x2f1   :  { %2028 = vsyncpa [#allocation6 + $0x1], 1 }
 0x2f2   :  { %2029 = vsyncpa [#allocation9], 1 }
 0x2f3   :  { %2031 = vsyncpa [#allocation9 + $0x1], 1 }
 0x2f4   :  { %2032 = vsyncpa [#allocation4], 1 }
 0x2f5   :  { %2034 = vsyncpa [#allocation4 + $0x1], 1 }

</bundles_post_ra>
